<compile_context>
chip_gen: v6e
topology: v6e:2x2x1
jax: 0.10.0
libtpu: 0.0.40
codegen_flags: <defaults>
</compile_context>

<pallas_src>
import functools

import jax
import jax.numpy as jnp
from jax.experimental import pallas as pl
from jax.experimental.pallas import tpu as pltpu

LEAKY_SLOPE = 0.01   # InPlaceABNSync default activation: leaky_relu, slope 0.01
BN_EPS = 1e-5


def _single_layer_bn_kernel(x_ref, scale_ref, shift_ref, w_ref, b_ref, mask_ref, out_ref,
                            *, Cin, Cin_p, Cout, D, H, W, zd):
    # x_ref:     (1, Cin_p, P)       x dtype, P = D*H*W on lanes (lane-dense)
    # scale_ref: (Cin_p, 1)          f32, gamma / sqrt(running_var + eps)
    # shift_ref: (Cin_p, 1)          f32, beta - running_mean * scale
    # w_ref:     (27, Cout, Cin_p)   f32, tap order (kd, kh, kw)
    # b_ref:     (Cout, 1)           f32
    # mask_ref:  (27, P)             f32, per-tap boundary masks (0/1)
    # out_ref:   (1, Cin+Cout, P)    x dtype; [0,Cin) = passthrough, [Cin,Cin+Cout) = conv
    P = D * H * W

    # ---- fused concat: copy the raw input channels straight into the output block ----
    out_ref[0, pl.ds(0, Cin), :] = x_ref[0, pl.ds(0, Cin), :].astype(out_ref.dtype)

    # ---- BN (eval-mode, running stats) + leaky_relu, fused elementwise in f32 ----
    x = x_ref[0].astype(jnp.float32)                     # (Cin_p, P)
    t = x * scale_ref[...] + shift_ref[...]              # (Cin_p, 1) broadcast over lanes
    y = jnp.where(t >= 0, t, LEAKY_SLOPE * t)            # (Cin_p, P) f32

    # ---- 3x3x3 conv as 27 roll + mask + matmul-accumulate taps (no im2col scratch) ----
    acc = jnp.zeros((Cout, P), jnp.float32)
    tap = 0
    for od in (-1, 0, 1):
        for oh in (-1, 0, 1):
            for ow_k in (-1, 0, 1):
                shift_amt = od * H * W + oh * W + ow_k * zd   # flat-index offset of this tap
                if shift_amt == 0:
                    rolled = y
                else:
                    rolled = pltpu.roll(y, (-shift_amt) % P, axis=1)
                masked = rolled * mask_ref[pl.ds(tap, 1), :]  # zero out-of-bounds positions
                acc = acc + jnp.dot(w_ref[tap], masked,
                                    preferred_element_type=jnp.float32)
                tap += 1

    out_ref[0, pl.ds(Cin, Cout), :] = (acc + b_ref[...]).astype(out_ref.dtype)


def make_single_layer_bn_params(gamma, beta, running_mean, running_var, weight, bias,
                                spatial_shape, z_dilation=1, z_padding=1):
    """Hoisted, per-module constant prep (build once, reuse every forward)."""
    D, H, W = spatial_shape
    Cout, Cin = int(weight.shape[0]), int(weight.shape[1])
    zd, zp = z_dilation, z_padding
    # Concat along channels requires the conv output spatial dims to match the input,
    # which (as in the torch module) requires z_padding == z_dilation.
    assert zp == zd, "z_padding must equal z_dilation for the channel concat to be valid"

    Cin_p = ((Cin + 7) // 8) * 8            # pad channels to a sublane multiple
    P = D * H * W

    # Fold BN (eval-mode, running stats) into per-channel scale/shift.
    scale = (gamma.astype(jnp.float32) /
             jnp.sqrt(running_var.astype(jnp.float32) + BN_EPS))
    shift = beta.astype(jnp.float32) - running_mean.astype(jnp.float32) * scale
    scale_p = jnp.zeros((Cin_p, 1), jnp.float32).at[:Cin, 0].set(scale)
    shift_p = jnp.zeros((Cin_p, 1), jnp.float32).at[:Cin, 0].set(shift)

    # Weight -> (27, Cout, Cin_p) f32, tap order (kd, kh, kw) matching the kernel loop.
    w_t = jnp.transpose(weight, (2, 3, 4, 0, 1)).astype(jnp.float32)   # (3,3,3,Cout,Cin)
    if Cin_p != Cin:
        w_t = jnp.pad(w_t, ((0, 0), (0, 0), (0, 0), (0, 0), (0, Cin_p - Cin)))
    w3 = w_t.reshape(27, Cout, Cin_p)

    b2 = bias.reshape(Cout, 1).astype(jnp.float32)

    # Precomputed per-tap boundary masks (avoids in-kernel integer div/mod).
    p_idx = jnp.arange(P, dtype=jnp.int32)
    d_idx = p_idx // (H * W)
    h_idx = (p_idx // W) % H
    w_idx = p_idx % W
    rows = []
    for od in (-1, 0, 1):
        for oh in (-1, 0, 1):
            for ow_k in (-1, 0, 1):
                ow = ow_k * zd
                valid = ((d_idx + od >= 0) & (d_idx + od < D) &
                         (h_idx + oh >= 0) & (h_idx + oh < H) &
                         (w_idx + ow >= 0) & (w_idx + ow < W))
                rows.append(valid.astype(jnp.float32))
    masks = jnp.stack(rows, axis=0)                                    # (27, P)

    return dict(scale=scale_p, shift=shift_p, w=w3, b=b2, masks=masks,
                Cin=Cin, Cin_p=Cin_p, Cout=Cout, D=D, H=H, W=W, zd=zd)


def single_layer_bn_apply(x_ncdhw, params):
    """Forward of SingleLayerBN. x_ncdhw: (N, Cin, D, H, W) -> (N, Cin+Cout, D, H, W)."""
    N, Cin, D, H, W = x_ncdhw.shape
    assert (Cin, D, H, W) == (params["Cin"], params["D"], params["H"], params["W"])
    Cin_p, Cout, zd = params["Cin_p"], params["Cout"], params["zd"]
    P = D * H * W
    C_total = Cin + Cout

    # Channel-first with spatial flattened onto lanes (free reshape, no transpose).
    x2 = x_ncdhw.reshape(N, Cin, P)
    if Cin_p != Cin:
        x2 = jnp.pad(x2, ((0, 0), (0, Cin_p - Cin), (0, 0)))

    kernel = functools.partial(_single_layer_bn_kernel,
                               Cin=Cin, Cin_p=Cin_p, Cout=Cout, D=D, H=H, W=W, zd=zd)

    out = pl.pallas_call(
        kernel,
        out_shape=jax.ShapeDtypeStruct((N, C_total, P), x_ncdhw.dtype),
        grid_spec=pltpu.PrefetchScalarGridSpec(
            num_scalar_prefetch=0,
            grid=(N,),
            in_specs=[
                pl.BlockSpec((1, Cin_p, P), lambda n: (n, 0, 0)),
                pl.BlockSpec((Cin_p, 1), lambda n: (0, 0)),
                pl.BlockSpec((Cin_p, 1), lambda n: (0, 0)),
                pl.BlockSpec((27, Cout, Cin_p), lambda n: (0, 0, 0)),
                pl.BlockSpec((Cout, 1), lambda n: (0, 0)),
                pl.BlockSpec((27, P), lambda n: (0, 0)),
            ],
            out_specs=pl.BlockSpec((1, C_total, P), lambda n: (n, 0, 0)),
        ),
        compiler_params=pltpu.CompilerParams(
            dimension_semantics=("parallel",),           # batch elements are independent
            vmem_limit_bytes=32 * 1024 * 1024,
        ),
    )(x2, params["scale"], params["shift"], params["w"], params["b"], params["masks"])

    # Output is already channel-first and concatenated: just un-flatten the spatial axis.
    return out.reshape(N, C_total, D, H, W)


def single_layer_bn(x_ncdhw, gamma, beta, running_mean, running_var, weight, bias,
                    z_dilation=1, z_padding=1):
    """Convenience one-shot wrapper (prep + apply)."""
    params = make_single_layer_bn_params(gamma, beta, running_mean, running_var,
                                         weight, bias, x_ncdhw.shape[2:],
                                         z_dilation, z_padding)
    return single_layer_bn_apply(x_ncdhw, params)


def _reference(x_ncdhw, gamma, beta, rm, rv, weight, bias, z_dilation=1, z_padding=1):
    scale = gamma / jnp.sqrt(rv + BN_EPS)
    shift = beta - rm * scale
    y = x_ncdhw * scale[None, :, None, None, None] + shift[None, :, None, None, None]
    y = jnp.where(y >= 0, y, LEAKY_SLOPE * y)
    conv = jax.lax.conv_general_dilated(
        y, weight,
        window_strides=(1, 1, 1),
        padding=((1, 1), (1, 1), (z_padding, z_padding)),
        rhs_dilation=(1, 1, z_dilation),
        dimension_numbers=("NCDHW", "OIDHW", "NCDHW"),
        precision=jax.lax.Precision.HIGHEST)
    conv = conv + bias[None, :, None, None, None]
    return jnp.concatenate([x_ncdhw, conv], axis=1)


if __name__ == "__main__":
    # Small shapes consistent with the module: N=2, inChannels=4, growth_Channels=8, D=H=W=8.
    N, Cin, Cout, D, H, W = 2, 4, 8, 8, 8, 8

    key = jax.random.PRNGKey(0)
    k = jax.random.split(key, 7)
    x = jax.random.normal(k[0], (N, Cin, D, H, W), jnp.float32)
    gamma = 1.0 + 0.1 * jax.random.normal(k[1], (Cin,), jnp.float32)
    beta = 0.1 * jax.random.normal(k[2], (Cin,), jnp.float32)
    running_mean = 0.1 * jax.random.normal(k[3], (Cin,), jnp.float32)
    running_var = 1.0 + 0.1 * jnp.abs(jax.random.normal(k[4], (Cin,), jnp.float32))
    weight = 0.1 * jax.random.normal(k[5], (Cout, Cin, 3, 3, 3), jnp.float32)
    bias = 0.1 * jax.random.normal(k[6], (Cout,), jnp.float32)

    # Constant prep hoisted: build once, reuse for every forward call.
    params = make_single_layer_bn_params(gamma, beta, running_mean, running_var,
                                         weight, bias, (D, H, W),
                                         z_dilation=1, z_padding=1)
    out = single_layer_bn_apply(x, params)
    out = jax.block_until_ready(out)

    assert out.shape == (N, Cin + Cout, D, H, W), out.shape

    ref = jax.block_until_ready(
        _reference(x, gamma, beta, running_mean, running_var, weight, bias))
    # f32 MXU path is typically accurate to ~1e-5; the margin below also covers TPU
    # backends that run f32 matmuls/convs as reduced-precision bf16 passes.
    if not bool(jnp.allclose(out, ref, atol=1e-2, rtol=1e-2)):
        raise AssertionError(
            f"mismatch vs reference, max abs diff = {float(jnp.max(jnp.abs(out - ref)))}")

    print("KERNEL_OK")
</pallas_src>

<mosaic_0001>
module attributes {stable_mosaic.version = 11 : i64} {
  func.func @_single_layer_bn_kernel(%arg0: i32, %arg1: memref<1x8x512xf32, #tpu.memory_space<vmem>>, %arg2: memref<8x1xf32, #tpu.memory_space<vmem>>, %arg3: memref<8x1xf32, #tpu.memory_space<vmem>>, %arg4: memref<27x8x8xf32, #tpu.memory_space<vmem>>, %arg5: memref<8x1xf32, #tpu.memory_space<vmem>>, %arg6: memref<27x512xf32, #tpu.memory_space<vmem>>, %arg7: memref<1x12x512xf32, #tpu.memory_space<vmem>>) attributes {dimension_semantics = [#tpu.dimension_semantics<parallel>], iteration_bounds = array<i64: 2>, scalar_prefetch = 0 : i64, scratch_operands = 0 : i64, tpu.core_type = #tpu.core_type<tc>, window_params = [{transform_indices = @transform_0, window_bounds = array<i64: 1, 8, 512>}, {pipeline_mode = #tpu.pipeline_mode<synchronous>, transform_indices = @transform_1, window_bounds = array<i64: 8, 1>}, {pipeline_mode = #tpu.pipeline_mode<synchronous>, transform_indices = @transform_2, window_bounds = array<i64: 8, 1>}, {pipeline_mode = #tpu.pipeline_mode<synchronous>, transform_indices = @transform_3, window_bounds = array<i64: 27, 8, 8>}, {pipeline_mode = #tpu.pipeline_mode<synchronous>, transform_indices = @transform_4, window_bounds = array<i64: 8, 1>}, {pipeline_mode = #tpu.pipeline_mode<synchronous>, transform_indices = @transform_5, window_bounds = array<i64: 27, 512>}, {transform_indices = @transform_6, window_bounds = array<i64: 1, 12, 512>}]} {
    %c0 = arith.constant 0 : index
    %c0_0 = arith.constant 0 : index
    %c0_1 = arith.constant 0 : index
    %0 = vector.load %arg1[%c0, %c0_0, %c0_1] : memref<1x8x512xf32, #tpu.memory_space<vmem>>, vector<1x4x512xf32>
    %1 = vector.shape_cast %0 : vector<1x4x512xf32> to vector<4x512xf32>
    %c0_2 = arith.constant 0 : index
    %c0_3 = arith.constant 0 : index
    %c0_4 = arith.constant 0 : index
    %2 = vector.load %arg7[%c0_2, %c0_3, %c0_4] : memref<1x12x512xf32, #tpu.memory_space<vmem>>, vector<1x4x512xf32>
    %3 = vector.shape_cast %2 : vector<1x4x512xf32> to vector<4x512xf32>
    %4 = vector.shape_cast %1 : vector<4x512xf32> to vector<1x4x512xf32>
    tpu.vector_store %arg7[%c0_2, %c0_3, %c0_4], %4 {strides = array<i32>} : memref<1x12x512xf32, #tpu.memory_space<vmem>>, vector<1x4x512xf32>,
    %c0_5 = arith.constant 0 : index
    %c0_6 = arith.constant 0 : index
    %c0_7 = arith.constant 0 : index
    %5 = vector.load %arg1[%c0_5, %c0_6, %c0_7] : memref<1x8x512xf32, #tpu.memory_space<vmem>>, vector<1x8x512xf32>
    %6 = vector.shape_cast %5 : vector<1x8x512xf32> to vector<8x512xf32>
    %c0_8 = arith.constant 0 : index
    %c0_9 = arith.constant 0 : index
    %7 = vector.load %arg2[%c0_8, %c0_9] : memref<8x1xf32, #tpu.memory_space<vmem>>, vector<8x1xf32>
    %8 = vector.broadcast %7 : vector<8x1xf32> to vector<8x512xf32>
    %9 = arith.mulf %6, %8 : vector<8x512xf32>
    %c0_10 = arith.constant 0 : index
    %c0_11 = arith.constant 0 : index
    %10 = vector.load %arg3[%c0_10, %c0_11] : memref<8x1xf32, #tpu.memory_space<vmem>>, vector<8x1xf32>
    %11 = vector.broadcast %10 : vector<8x1xf32> to vector<8x512xf32>
    %12 = arith.addf %9, %11 : vector<8x512xf32>
    %cst = arith.constant 0.000000e+00 : f32
    %13 = vector.broadcast %cst : f32 to vector<8x512xf32>
    %14 = arith.cmpf oge, %12, %13 : vector<8x512xf32>
    %cst_12 = arith.constant 0.00999999977 : f32
    %15 = vector.broadcast %cst_12 : f32 to vector<8x512xf32>
    %16 = arith.mulf %15, %12 : vector<8x512xf32>
    %17 = arith.select %14, %12, %16 : vector<8x512xi1>, vector<8x512xf32>
    %cst_13 = arith.constant 0.000000e+00 : f32
    %18 = vector.broadcast %cst_13 : f32 to vector<8x512xf32>
    %c73_i32 = arith.constant 73 : i32
    %19 = tpu.dynamic_rotate %17 by %c73_i32 dim 1 : vector<8x512xf32>, i32 -> vector<8x512xf32>
    %c0_14 = arith.constant 0 : index
    %c0_15 = arith.constant 0 : index
    %20 = vector.load %arg6[%c0_14, %c0_15] : memref<27x512xf32, #tpu.memory_space<vmem>>, vector<1x512xf32>
    %21 = vector.broadcast %20 : vector<1x512xf32> to vector<8x512xf32>
    %22 = arith.mulf %19, %21 : vector<8x512xf32>
    %c0_16 = arith.constant 0 : index
    %c0_17 = arith.constant 0 : index
    %c0_18 = arith.constant 0 : index
    %23 = vector.load %arg4[%c0_16, %c0_17, %c0_18] : memref<27x8x8xf32, #tpu.memory_space<vmem>>, vector<1x8x8xf32>
    %24 = vector.shape_cast %23 : vector<1x8x8xf32> to vector<8x8xf32>
    %cst_19 = arith.constant dense<0.000000e+00> : vector<8x512xf32>
    %25 = tpu.matmul %24, %22, %cst_19 {dimension_numbers = #tpu.dot_dimension_numbers<[1], [0], [0], [1], [0, 0, 1, 1], [], []>} : vector<8x8xf32>, vector<8x512xf32>, vector<8x512xf32> -> vector<8x512xf32>
    %26 = arith.addf %18, %25 : vector<8x512xf32>
    %c72_i32 = arith.constant 72 : i32
    %27 = tpu.dynamic_rotate %17 by %c72_i32 dim 1 : vector<8x512xf32>, i32 -> vector<8x512xf32>
    %c1 = arith.constant 1 : index
    %c0_20 = arith.constant 0 : index
    %28 = vector.load %arg6[%c1, %c0_20] : memref<27x512xf32, #tpu.memory_space<vmem>>, vector<1x512xf32>
    %29 = vector.broadcast %28 : vector<1x512xf32> to vector<8x512xf32>
    %30 = arith.mulf %27, %29 : vector<8x512xf32>
    %c1_21 = arith.constant 1 : index
    %c0_22 = arith.constant 0 : index
    %c0_23 = arith.constant 0 : index
    %31 = vector.load %arg4[%c1_21, %c0_22, %c0_23] : memref<27x8x8xf32, #tpu.memory_space<vmem>>, vector<1x8x8xf32>
    %32 = vector.shape_cast %31 : vector<1x8x8xf32> to vector<8x8xf32>
    %cst_24 = arith.constant dense<0.000000e+00> : vector<8x512xf32>
    %33 = tpu.matmul %32, %30, %cst_24 {dimension_numbers = #tpu.dot_dimension_numbers<[1], [0], [0], [1], [0, 0, 1, 1], [], []>} : vector<8x8xf32>, vector<8x512xf32>, vector<8x512xf32> -> vector<8x512xf32>
    %34 = arith.addf %26, %33 : vector<8x512xf32>
    %c71_i32 = arith.constant 71 : i32
    %35 = tpu.dynamic_rotate %17 by %c71_i32 dim 1 : vector<8x512xf32>, i32 -> vector<8x512xf32>
    %c2 = arith.constant 2 : index
    %c0_25 = arith.constant 0 : index
    %36 = vector.load %arg6[%c2, %c0_25] : memref<27x512xf32, #tpu.memory_space<vmem>>, vector<1x512xf32>
    %37 = vector.broadcast %36 : vector<1x512xf32> to vector<8x512xf32>
    %38 = arith.mulf %35, %37 : vector<8x512xf32>
    %c2_26 = arith.constant 2 : index
    %c0_27 = arith.constant 0 : index
    %c0_28 = arith.constant 0 : index
    %39 = vector.load %arg4[%c2_26, %c0_27, %c0_28] : memref<27x8x8xf32, #tpu.memory_space<vmem>>, vector<1x8x8xf32>
    %40 = vector.shape_cast %39 : vector<1x8x8xf32> to vector<8x8xf32>
    %cst_29 = arith.constant dense<0.000000e+00> : vector<8x512xf32>
    %41 = tpu.matmul %40, %38, %cst_29 {dimension_numbers = #tpu.dot_dimension_numbers<[1], [0], [0], [1], [0, 0, 1, 1], [], []>} : vector<8x8xf32>, vector<8x512xf32>, vector<8x512xf32> -> vector<8x512xf32>
    %42 = arith.addf %34, %41 : vector<8x512xf32>
    %c65_i32 = arith.constant 65 : i32
    %43 = tpu.dynamic_rotate %17 by %c65_i32 dim 1 : vector<8x512xf32>, i32 -> vector<8x512xf32>
    %c3 = arith.constant 3 : index
    %c0_30 = arith.constant 0 : index
    %44 = vector.load %arg6[%c3, %c0_30] : memref<27x512xf32, #tpu.memory_space<vmem>>, vector<1x512xf32>
    %45 = vector.broadcast %44 : vector<1x512xf32> to vector<8x512xf32>
    %46 = arith.mulf %43, %45 : vector<8x512xf32>
    %c3_31 = arith.constant 3 : index
    %c0_32 = arith.constant 0 : index
    %c0_33 = arith.constant 0 : index
    %47 = vector.load %arg4[%c3_31, %c0_32, %c0_33] : memref<27x8x8xf32, #tpu.memory_space<vmem>>, vector<1x8x8xf32>
    %48 = vector.shape_cast %47 : vector<1x8x8xf32> to vector<8x8xf32>
    %cst_34 = arith.constant dense<0.000000e+00> : vector<8x512xf32>
    %49 = tpu.matmul %48, %46, %cst_34 {dimension_numbers = #tpu.dot_dimension_numbers<[1], [0], [0], [1], [0, 0, 1, 1], [], []>} : vector<8x8xf32>, vector<8x512xf32>, vector<8x512xf32> -> vector<8x512xf32>
    %50 = arith.addf %42, %49 : vector<8x512xf32>
    %c64_i32 = arith.constant 64 : i32
    %51 = tpu.dynamic_rotate %17 by %c64_i32 dim 1 : vector<8x512xf32>, i32 -> vector<8x512xf32>
    %c4 = arith.constant 4 : index
    %c0_35 = arith.constant 0 : index
    %52 = vector.load %arg6[%c4, %c0_35] : memref<27x512xf32, #tpu.memory_space<vmem>>, vector<1x512xf32>
    %53 = vector.broadcast %52 : vector<1x512xf32> to vector<8x512xf32>
    %54 = arith.mulf %51, %53 : vector<8x512xf32>
    %c4_36 = arith.constant 4 : index
    %c0_37 = arith.constant 0 : index
    %c0_38 = arith.constant 0 : index
    %55 = vector.load %arg4[%c4_36, %c0_37, %c0_38] : memref<27x8x8xf32, #tpu.memory_space<vmem>>, vector<1x8x8xf32>
    %56 = vector.shape_cast %55 : vector<1x8x8xf32> to vector<8x8xf32>
    %cst_39 = arith.constant dense<0.000000e+00> : vector<8x512xf32>
    %57 = tpu.matmul %56, %54, %cst_39 {dimension_numbers = #tpu.dot_dimension_numbers<[1], [0], [0], [1], [0, 0, 1, 1], [], []>} : vector<8x8xf32>, vector<8x512xf32>, vector<8x512xf32> -> vector<8x512xf32>
    %58 = arith.addf %50, %57 : vector<8x512xf32>
    %c63_i32 = arith.constant 63 : i32
    %59 = tpu.dynamic_rotate %17 by %c63_i32 dim 1 : vector<8x512xf32>, i32 -> vector<8x512xf32>
    %c5 = arith.constant 5 : index
    %c0_40 = arith.constant 0 : index
    %60 = vector.load %arg6[%c5, %c0_40] : memref<27x512xf32, #tpu.memory_space<vmem>>, vector<1x512xf32>
    %61 = vector.broadcast %60 : vector<1x512xf32> to vector<8x512xf32>
    %62 = arith.mulf %59, %61 : vector<8x512xf32>
    %c5_41 = arith.constant 5 : index
    %c0_42 = arith.constant 0 : index
    %c0_43 = arith.constant 0 : index
    %63 = vector.load %arg4[%c5_41, %c0_42, %c0_43] : memref<27x8x8xf32, #tpu.memory_space<vmem>>, vector<1x8x8xf32>
    %64 = vector.shape_cast %63 : vector<1x8x8xf32> to vector<8x8xf32>
    %cst_44 = arith.constant dense<0.000000e+00> : vector<8x512xf32>
    %65 = tpu.matmul %64, %62, %cst_44 {dimension_numbers = #tpu.dot_dimension_numbers<[1], [0], [0], [1], [0, 0, 1, 1], [], []>} : vector<8x8xf32>, vector<8x512xf32>, vector<8x512xf32> -> vector<8x512xf32>
    %66 = arith.addf %58, %65 : vector<8x512xf32>
    %c57_i32 = arith.constant 57 : i32
    %67 = tpu.dynamic_rotate %17 by %c57_i32 dim 1 : vector<8x512xf32>, i32 -> vector<8x512xf32>
    %c6 = arith.constant 6 : index
    %c0_45 = arith.constant 0 : index
    %68 = vector.load %arg6[%c6, %c0_45] : memref<27x512xf32, #tpu.memory_space<vmem>>, vector<1x512xf32>
    %69 = vector.broadcast %68 : vector<1x512xf32> to vector<8x512xf32>
    %70 = arith.mulf %67, %69 : vector<8x512xf32>
    %c6_46 = arith.constant 6 : index
    %c0_47 = arith.constant 0 : index
    %c0_48 = arith.constant 0 : index
    %71 = vector.load %arg4[%c6_46, %c0_47, %c0_48] : memref<27x8x8xf32, #tpu.memory_space<vmem>>, vector<1x8x8xf32>
    %72 = vector.shape_cast %71 : vector<1x8x8xf32> to vector<8x8xf32>
    %cst_49 = arith.constant dense<0.000000e+00> : vector<8x512xf32>
    %73 = tpu.matmul %72, %70, %cst_49 {dimension_numbers = #tpu.dot_dimension_numbers<[1], [0], [0], [1], [0, 0, 1, 1], [], []>} : vector<8x8xf32>, vector<8x512xf32>, vector<8x512xf32> -> vector<8x512xf32>
    %74 = arith.addf %66, %73 : vector<8x512xf32>
    %c56_i32 = arith.constant 56 : i32
    %75 = tpu.dynamic_rotate %17 by %c56_i32 dim 1 : vector<8x512xf32>, i32 -> vector<8x512xf32>
    %c7 = arith.constant 7 : index
    %c0_50 = arith.constant 0 : index
    %76 = vector.load %arg6[%c7, %c0_50] : memref<27x512xf32, #tpu.memory_space<vmem>>, vector<1x512xf32>
    %77 = vector.broadcast %76 : vector<1x512xf32> to vector<8x512xf32>
    %78 = arith.mulf %75, %77 : vector<8x512xf32>
    %c7_51 = arith.constant 7 : index
    %c0_52 = arith.constant 0 : index
    %c0_53 = arith.constant 0 : index
    %79 = vector.load %arg4[%c7_51, %c0_52, %c0_53] : memref<27x8x8xf32, #tpu.memory_space<vmem>>, vector<1x8x8xf32>
    %80 = vector.shape_cast %79 : vector<1x8x8xf32> to vector<8x8xf32>
    %cst_54 = arith.constant dense<0.000000e+00> : vector<8x512xf32>
    %81 = tpu.matmul %80, %78, %cst_54 {dimension_numbers = #tpu.dot_dimension_numbers<[1], [0], [0], [1], [0, 0, 1, 1], [], []>} : vector<8x8xf32>, vector<8x512xf32>, vector<8x512xf32> -> vector<8x512xf32>
    %82 = arith.addf %74, %81 : vector<8x512xf32>
    %c55_i32 = arith.constant 55 : i32
    %83 = tpu.dynamic_rotate %17 by %c55_i32 dim 1 : vector<8x512xf32>, i32 -> vector<8x512xf32>
    %c8 = arith.constant 8 : index
    %c0_55 = arith.constant 0 : index
    %84 = vector.load %arg6[%c8, %c0_55] : memref<27x512xf32, #tpu.memory_space<vmem>>, vector<1x512xf32>
    %85 = vector.broadcast %84 : vector<1x512xf32> to vector<8x512xf32>
    %86 = arith.mulf %83, %85 : vector<8x512xf32>
    %c8_56 = arith.constant 8 : index
    %c0_57 = arith.constant 0 : index
    %c0_58 = arith.constant 0 : index
    %87 = vector.load %arg4[%c8_56, %c0_57, %c0_58] : memref<27x8x8xf32, #tpu.memory_space<vmem>>, vector<1x8x8xf32>
    %88 = vector.shape_cast %87 : vector<1x8x8xf32> to vector<8x8xf32>
    %cst_59 = arith.constant dense<0.000000e+00> : vector<8x512xf32>
    %89 = tpu.matmul %88, %86, %cst_59 {dimension_numbers = #tpu.dot_dimension_numbers<[1], [0], [0], [1], [0, 0, 1, 1], [], []>} : vector<8x8xf32>, vector<8x512xf32>, vector<8x512xf32> -> vector<8x512xf32>
    %90 = arith.addf %82, %89 : vector<8x512xf32>
    %c9_i32 = arith.constant 9 : i32
    %91 = tpu.dynamic_rotate %17 by %c9_i32 dim 1 : vector<8x512xf32>, i32 -> vector<8x512xf32>
    %c9 = arith.constant 9 : index
    %c0_60 = arith.constant 0 : index
    %92 = vector.load %arg6[%c9, %c0_60] : memref<27x512xf32, #tpu.memory_space<vmem>>, vector<1x512xf32>
    %93 = vector.broadcast %92 : vector<1x512xf32> to vector<8x512xf32>
    %94 = arith.mulf %91, %93 : vector<8x512xf32>
    %c9_61 = arith.constant 9 : index
    %c0_62 = arith.constant 0 : index
    %c0_63 = arith.constant 0 : index
    %95 = vector.load %arg4[%c9_61, %c0_62, %c0_63] : memref<27x8x8xf32, #tpu.memory_space<vmem>>, vector<1x8x8xf32>
    %96 = vector.shape_cast %95 : vector<1x8x8xf32> to vector<8x8xf32>
    %cst_64 = arith.constant dense<0.000000e+00> : vector<8x512xf32>
    %97 = tpu.matmul %96, %94, %cst_64 {dimension_numbers = #tpu.dot_dimension_numbers<[1], [0], [0], [1], [0, 0, 1, 1], [], []>} : vector<8x8xf32>, vector<8x512xf32>, vector<8x512xf32> -> vector<8x512xf32>
    %98 = arith.addf %90, %97 : vector<8x512xf32>
    %c8_i32 = arith.constant 8 : i32
    %99 = tpu.dynamic_rotate %17 by %c8_i32 dim 1 : vector<8x512xf32>, i32 -> vector<8x512xf32>
    %c10 = arith.constant 10 : index
    %c0_65 = arith.constant 0 : index
    %100 = vector.load %arg6[%c10, %c0_65] : memref<27x512xf32, #tpu.memory_space<vmem>>, vector<1x512xf32>
    %101 = vector.broadcast %100 : vector<1x512xf32> to vector<8x512xf32>
    %102 = arith.mulf %99, %101 : vector<8x512xf32>
    %c10_66 = arith.constant 10 : index
    %c0_67 = arith.constant 0 : index
    %c0_68 = arith.constant 0 : index
    %103 = vector.load %arg4[%c10_66, %c0_67, %c0_68] : memref<27x8x8xf32, #tpu.memory_space<vmem>>, vector<1x8x8xf32>
    %104 = vector.shape_cast %103 : vector<1x8x8xf32> to vector<8x8xf32>
    %cst_69 = arith.constant dense<0.000000e+00> : vector<8x512xf32>
    %105 = tpu.matmul %104, %102, %cst_69 {dimension_numbers = #tpu.dot_dimension_numbers<[1], [0], [0], [1], [0, 0, 1, 1], [], []>} : vector<8x8xf32>, vector<8x512xf32>, vector<8x512xf32> -> vector<8x512xf32>
    %106 = arith.addf %98, %105 : vector<8x512xf32>
    %c7_i32 = arith.constant 7 : i32
    %107 = tpu.dynamic_rotate %17 by %c7_i32 dim 1 : vector<8x512xf32>, i32 -> vector<8x512xf32>
    %c11 = arith.constant 11 : index
    %c0_70 = arith.constant 0 : index
    %108 = vector.load %arg6[%c11, %c0_70] : memref<27x512xf32, #tpu.memory_space<vmem>>, vector<1x512xf32>
    %109 = vector.broadcast %108 : vector<1x512xf32> to vector<8x512xf32>
    %110 = arith.mulf %107, %109 : vector<8x512xf32>
    %c11_71 = arith.constant 11 : index
    %c0_72 = arith.constant 0 : index
    %c0_73 = arith.constant 0 : index
    %111 = vector.load %arg4[%c11_71, %c0_72, %c0_73] : memref<27x8x8xf32, #tpu.memory_space<vmem>>, vector<1x8x8xf32>
    %112 = vector.shape_cast %111 : vector<1x8x8xf32> to vector<8x8xf32>
    %cst_74 = arith.constant dense<0.000000e+00> : vector<8x512xf32>
    %113 = tpu.matmul %112, %110, %cst_74 {dimension_numbers = #tpu.dot_dimension_numbers<[1], [0], [0], [1], [0, 0, 1, 1], [], []>} : vector<8x8xf32>, vector<8x512xf32>, vector<8x512xf32> -> vector<8x512xf32>
    %114 = arith.addf %106, %113 : vector<8x512xf32>
    %c1_i32 = arith.constant 1 : i32
    %115 = tpu.dynamic_rotate %17 by %c1_i32 dim 1 : vector<8x512xf32>, i32 -> vector<8x512xf32>
    %c12 = arith.constant 12 : index
    %c0_75 = arith.constant 0 : index
    %116 = vector.load %arg6[%c12, %c0_75] : memref<27x512xf32, #tpu.memory_space<vmem>>, vector<1x512xf32>
    %117 = vector.broadcast %116 : vector<1x512xf32> to vector<8x512xf32>
    %118 = arith.mulf %115, %117 : vector<8x512xf32>
    %c12_76 = arith.constant 12 : index
    %c0_77 = arith.constant 0 : index
    %c0_78 = arith.constant 0 : index
    %119 = vector.load %arg4[%c12_76, %c0_77, %c0_78] : memref<27x8x8xf32, #tpu.memory_space<vmem>>, vector<1x8x8xf32>
    %120 = vector.shape_cast %119 : vector<1x8x8xf32> to vector<8x8xf32>
    %cst_79 = arith.constant dense<0.000000e+00> : vector<8x512xf32>
    %121 = tpu.matmul %120, %118, %cst_79 {dimension_numbers = #tpu.dot_dimension_numbers<[1], [0], [0], [1], [0, 0, 1, 1], [], []>} : vector<8x8xf32>, vector<8x512xf32>, vector<8x512xf32> -> vector<8x512xf32>
    %122 = arith.addf %114, %121 : vector<8x512xf32>
    %c13 = arith.constant 13 : index
    %c0_80 = arith.constant 0 : index
    %123 = vector.load %arg6[%c13, %c0_80] : memref<27x512xf32, #tpu.memory_space<vmem>>, vector<1x512xf32>
    %124 = vector.broadcast %123 : vector<1x512xf32> to vector<8x512xf32>
    %125 = arith.mulf %17, %124 : vector<8x512xf32>
    %c13_81 = arith.constant 13 : index
    %c0_82 = arith.constant 0 : index
    %c0_83 = arith.constant 0 : index
    %126 = vector.load %arg4[%c13_81, %c0_82, %c0_83] : memref<27x8x8xf32, #tpu.memory_space<vmem>>, vector<1x8x8xf32>
    %127 = vector.shape_cast %126 : vector<1x8x8xf32> to vector<8x8xf32>
    %cst_84 = arith.constant dense<0.000000e+00> : vector<8x512xf32>
    %128 = tpu.matmul %127, %125, %cst_84 {dimension_numbers = #tpu.dot_dimension_numbers<[1], [0], [0], [1], [0, 0, 1, 1], [], []>} : vector<8x8xf32>, vector<8x512xf32>, vector<8x512xf32> -> vector<8x512xf32>
    %129 = arith.addf %122, %128 : vector<8x512xf32>
    %c511_i32 = arith.constant 511 : i32
    %130 = tpu.dynamic_rotate %17 by %c511_i32 dim 1 : vector<8x512xf32>, i32 -> vector<8x512xf32>
    %c14 = arith.constant 14 : index
    %c0_85 = arith.constant 0 : index
    %131 = vector.load %arg6[%c14, %c0_85] : memref<27x512xf32, #tpu.memory_space<vmem>>, vector<1x512xf32>
    %132 = vector.broadcast %131 : vector<1x512xf32> to vector<8x512xf32>
    %133 = arith.mulf %130, %132 : vector<8x512xf32>
    %c14_86 = arith.constant 14 : index
    %c0_87 = arith.constant 0 : index
    %c0_88 = arith.constant 0 : index
    %134 = vector.load %arg4[%c14_86, %c0_87, %c0_88] : memref<27x8x8xf32, #tpu.memory_space<vmem>>, vector<1x8x8xf32>
    %135 = vector.shape_cast %134 : vector<1x8x8xf32> to vector<8x8xf32>
    %cst_89 = arith.constant dense<0.000000e+00> : vector<8x512xf32>
    %136 = tpu.matmul %135, %133, %cst_89 {dimension_numbers = #tpu.dot_dimension_numbers<[1], [0], [0], [1], [0, 0, 1, 1], [], []>} : vector<8x8xf32>, vector<8x512xf32>, vector<8x512xf32> -> vector<8x512xf32>
    %137 = arith.addf %129, %136 : vector<8x512xf32>
    %c505_i32 = arith.constant 505 : i32
    %138 = tpu.dynamic_rotate %17 by %c505_i32 dim 1 : vector<8x512xf32>, i32 -> vector<8x512xf32>
    %c15 = arith.constant 15 : index
    %c0_90 = arith.constant 0 : index
    %139 = vector.load %arg6[%c15, %c0_90] : memref<27x512xf32, #tpu.memory_space<vmem>>, vector<1x512xf32>
    %140 = vector.broadcast %139 : vector<1x512xf32> to vector<8x512xf32>
    %141 = arith.mulf %138, %140 : vector<8x512xf32>
    %c15_91 = arith.constant 15 : index
    %c0_92 = arith.constant 0 : index
    %c0_93 = arith.constant 0 : index
    %142 = vector.load %arg4[%c15_91, %c0_92, %c0_93] : memref<27x8x8xf32, #tpu.memory_space<vmem>>, vector<1x8x8xf32>
    %143 = vector.shape_cast %142 : vector<1x8x8xf32> to vector<8x8xf32>
    %cst_94 = arith.constant dense<0.000000e+00> : vector<8x512xf32>
    %144 = tpu.matmul %143, %141, %cst_94 {dimension_numbers = #tpu.dot_dimension_numbers<[1], [0], [0], [1], [0, 0, 1, 1], [], []>} : vector<8x8xf32>, vector<8x512xf32>, vector<8x512xf32> -> vector<8x512xf32>
    %145 = arith.addf %137, %144 : vector<8x512xf32>
    %c504_i32 = arith.constant 504 : i32
    %146 = tpu.dynamic_rotate %17 by %c504_i32 dim 1 : vector<8x512xf32>, i32 -> vector<8x512xf32>
    %c16 = arith.constant 16 : index
    %c0_95 = arith.constant 0 : index
    %147 = vector.load %arg6[%c16, %c0_95] : memref<27x512xf32, #tpu.memory_space<vmem>>, vector<1x512xf32>
    %148 = vector.broadcast %147 : vector<1x512xf32> to vector<8x512xf32>
    %149 = arith.mulf %146, %148 : vector<8x512xf32>
    %c16_96 = arith.constant 16 : index
    %c0_97 = arith.constant 0 : index
    %c0_98 = arith.constant 0 : index
    %150 = vector.load %arg4[%c16_96, %c0_97, %c0_98] : memref<27x8x8xf32, #tpu.memory_space<vmem>>, vector<1x8x8xf32>
    %151 = vector.shape_cast %150 : vector<1x8x8xf32> to vector<8x8xf32>
    %cst_99 = arith.constant dense<0.000000e+00> : vector<8x512xf32>
    %152 = tpu.matmul %151, %149, %cst_99 {dimension_numbers = #tpu.dot_dimension_numbers<[1], [0], [0], [1], [0, 0, 1, 1], [], []>} : vector<8x8xf32>, vector<8x512xf32>, vector<8x512xf32> -> vector<8x512xf32>
    %153 = arith.addf %145, %152 : vector<8x512xf32>
    %c503_i32 = arith.constant 503 : i32
    %154 = tpu.dynamic_rotate %17 by %c503_i32 dim 1 : vector<8x512xf32>, i32 -> vector<8x512xf32>
    %c17 = arith.constant 17 : index
    %c0_100 = arith.constant 0 : index
    %155 = vector.load %arg6[%c17, %c0_100] : memref<27x512xf32, #tpu.memory_space<vmem>>, vector<1x512xf32>
    %156 = vector.broadcast %155 : vector<1x512xf32> to vector<8x512xf32>
    %157 = arith.mulf %154, %156 : vector<8x512xf32>
    %c17_101 = arith.constant 17 : index
    %c0_102 = arith.constant 0 : index
    %c0_103 = arith.constant 0 : index
    %158 = vector.load %arg4[%c17_101, %c0_102, %c0_103] : memref<27x8x8xf32, #tpu.memory_space<vmem>>, vector<1x8x8xf32>
    %159 = vector.shape_cast %158 : vector<1x8x8xf32> to vector<8x8xf32>
    %cst_104 = arith.constant dense<0.000000e+00> : vector<8x512xf32>
    %160 = tpu.matmul %159, %157, %cst_104 {dimension_numbers = #tpu.dot_dimension_numbers<[1], [0], [0], [1], [0, 0, 1, 1], [], []>} : vector<8x8xf32>, vector<8x512xf32>, vector<8x512xf32> -> vector<8x512xf32>
    %161 = arith.addf %153, %160 : vector<8x512xf32>
    %c457_i32 = arith.constant 457 : i32
    %162 = tpu.dynamic_rotate %17 by %c457_i32 dim 1 : vector<8x512xf32>, i32 -> vector<8x512xf32>
    %c18 = arith.constant 18 : index
    %c0_105 = arith.constant 0 : index
    %163 = vector.load %arg6[%c18, %c0_105] : memref<27x512xf32, #tpu.memory_space<vmem>>, vector<1x512xf32>
    %164 = vector.broadcast %163 : vector<1x512xf32> to vector<8x512xf32>
    %165 = arith.mulf %162, %164 : vector<8x512xf32>
    %c18_106 = arith.constant 18 : index
    %c0_107 = arith.constant 0 : index
    %c0_108 = arith.constant 0 : index
    %166 = vector.load %arg4[%c18_106, %c0_107, %c0_108] : memref<27x8x8xf32, #tpu.memory_space<vmem>>, vector<1x8x8xf32>
    %167 = vector.shape_cast %166 : vector<1x8x8xf32> to vector<8x8xf32>
    %cst_109 = arith.constant dense<0.000000e+00> : vector<8x512xf32>
    %168 = tpu.matmul %167, %165, %cst_109 {dimension_numbers = #tpu.dot_dimension_numbers<[1], [0], [0], [1], [0, 0, 1, 1], [], []>} : vector<8x8xf32>, vector<8x512xf32>, vector<8x512xf32> -> vector<8x512xf32>
    %169 = arith.addf %161, %168 : vector<8x512xf32>
    %c456_i32 = arith.constant 456 : i32
    %170 = tpu.dynamic_rotate %17 by %c456_i32 dim 1 : vector<8x512xf32>, i32 -> vector<8x512xf32>
    %c19 = arith.constant 19 : index
    %c0_110 = arith.constant 0 : index
    %171 = vector.load %arg6[%c19, %c0_110] : memref<27x512xf32, #tpu.memory_space<vmem>>, vector<1x512xf32>
    %172 = vector.broadcast %171 : vector<1x512xf32> to vector<8x512xf32>
    %173 = arith.mulf %170, %172 : vector<8x512xf32>
    %c19_111 = arith.constant 19 : index
    %c0_112 = arith.constant 0 : index
    %c0_113 = arith.constant 0 : index
    %174 = vector.load %arg4[%c19_111, %c0_112, %c0_113] : memref<27x8x8xf32, #tpu.memory_space<vmem>>, vector<1x8x8xf32>
    %175 = vector.shape_cast %174 : vector<1x8x8xf32> to vector<8x8xf32>
    %cst_114 = arith.constant dense<0.000000e+00> : vector<8x512xf32>
    %176 = tpu.matmul %175, %173, %cst_114 {dimension_numbers = #tpu.dot_dimension_numbers<[1], [0], [0], [1], [0, 0, 1, 1], [], []>} : vector<8x8xf32>, vector<8x512xf32>, vector<8x512xf32> -> vector<8x512xf32>
    %177 = arith.addf %169, %176 : vector<8x512xf32>
    %c455_i32 = arith.constant 455 : i32
    %178 = tpu.dynamic_rotate %17 by %c455_i32 dim 1 : vector<8x512xf32>, i32 -> vector<8x512xf32>
    %c20 = arith.constant 20 : index
    %c0_115 = arith.constant 0 : index
    %179 = vector.load %arg6[%c20, %c0_115] : memref<27x512xf32, #tpu.memory_space<vmem>>, vector<1x512xf32>
    %180 = vector.broadcast %179 : vector<1x512xf32> to vector<8x512xf32>
    %181 = arith.mulf %178, %180 : vector<8x512xf32>
    %c20_116 = arith.constant 20 : index
    %c0_117 = arith.constant 0 : index
    %c0_118 = arith.constant 0 : index
    %182 = vector.load %arg4[%c20_116, %c0_117, %c0_118] : memref<27x8x8xf32, #tpu.memory_space<vmem>>, vector<1x8x8xf32>
    %183 = vector.shape_cast %182 : vector<1x8x8xf32> to vector<8x8xf32>
    %cst_119 = arith.constant dense<0.000000e+00> : vector<8x512xf32>
    %184 = tpu.matmul %183, %181, %cst_119 {dimension_numbers = #tpu.dot_dimension_numbers<[1], [0], [0], [1], [0, 0, 1, 1], [], []>} : vector<8x8xf32>, vector<8x512xf32>, vector<8x512xf32> -> vector<8x512xf32>
    %185 = arith.addf %177, %184 : vector<8x512xf32>
    %c449_i32 = arith.constant 449 : i32
    %186 = tpu.dynamic_rotate %17 by %c449_i32 dim 1 : vector<8x512xf32>, i32 -> vector<8x512xf32>
    %c21 = arith.constant 21 : index
    %c0_120 = arith.constant 0 : index
    %187 = vector.load %arg6[%c21, %c0_120] : memref<27x512xf32, #tpu.memory_space<vmem>>, vector<1x512xf32>
    %188 = vector.broadcast %187 : vector<1x512xf32> to vector<8x512xf32>
    %189 = arith.mulf %186, %188 : vector<8x512xf32>
    %c21_121 = arith.constant 21 : index
    %c0_122 = arith.constant 0 : index
    %c0_123 = arith.constant 0 : index
    %190 = vector.load %arg4[%c21_121, %c0_122, %c0_123] : memref<27x8x8xf32, #tpu.memory_space<vmem>>, vector<1x8x8xf32>
    %191 = vector.shape_cast %190 : vector<1x8x8xf32> to vector<8x8xf32>
    %cst_124 = arith.constant dense<0.000000e+00> : vector<8x512xf32>
    %192 = tpu.matmul %191, %189, %cst_124 {dimension_numbers = #tpu.dot_dimension_numbers<[1], [0], [0], [1], [0, 0, 1, 1], [], []>} : vector<8x8xf32>, vector<8x512xf32>, vector<8x512xf32> -> vector<8x512xf32>
    %193 = arith.addf %185, %192 : vector<8x512xf32>
    %c448_i32 = arith.constant 448 : i32
    %194 = tpu.dynamic_rotate %17 by %c448_i32 dim 1 : vector<8x512xf32>, i32 -> vector<8x512xf32>
    %c22 = arith.constant 22 : index
    %c0_125 = arith.constant 0 : index
    %195 = vector.load %arg6[%c22, %c0_125] : memref<27x512xf32, #tpu.memory_space<vmem>>, vector<1x512xf32>
    %196 = vector.broadcast %195 : vector<1x512xf32> to vector<8x512xf32>
    %197 = arith.mulf %194, %196 : vector<8x512xf32>
    %c22_126 = arith.constant 22 : index
    %c0_127 = arith.constant 0 : index
    %c0_128 = arith.constant 0 : index
    %198 = vector.load %arg4[%c22_126, %c0_127, %c0_128] : memref<27x8x8xf32, #tpu.memory_space<vmem>>, vector<1x8x8xf32>
    %199 = vector.shape_cast %198 : vector<1x8x8xf32> to vector<8x8xf32>
    %cst_129 = arith.constant dense<0.000000e+00> : vector<8x512xf32>
    %200 = tpu.matmul %199, %197, %cst_129 {dimension_numbers = #tpu.dot_dimension_numbers<[1], [0], [0], [1], [0, 0, 1, 1], [], []>} : vector<8x8xf32>, vector<8x512xf32>, vector<8x512xf32> -> vector<8x512xf32>
    %201 = arith.addf %193, %200 : vector<8x512xf32>
    %c447_i32 = arith.constant 447 : i32
    %202 = tpu.dynamic_rotate %17 by %c447_i32 dim 1 : vector<8x512xf32>, i32 -> vector<8x512xf32>
    %c23 = arith.constant 23 : index
    %c0_130 = arith.constant 0 : index
    %203 = vector.load %arg6[%c23, %c0_130] : memref<27x512xf32, #tpu.memory_space<vmem>>, vector<1x512xf32>
    %204 = vector.broadcast %203 : vector<1x512xf32> to vector<8x512xf32>
    %205 = arith.mulf %202, %204 : vector<8x512xf32>
    %c23_131 = arith.constant 23 : index
    %c0_132 = arith.constant 0 : index
    %c0_133 = arith.constant 0 : index
    %206 = vector.load %arg4[%c23_131, %c0_132, %c0_133] : memref<27x8x8xf32, #tpu.memory_space<vmem>>, vector<1x8x8xf32>
    %207 = vector.shape_cast %206 : vector<1x8x8xf32> to vector<8x8xf32>
    %cst_134 = arith.constant dense<0.000000e+00> : vector<8x512xf32>
    %208 = tpu.matmul %207, %205, %cst_134 {dimension_numbers = #tpu.dot_dimension_numbers<[1], [0], [0], [1], [0, 0, 1, 1], [], []>} : vector<8x8xf32>, vector<8x512xf32>, vector<8x512xf32> -> vector<8x512xf32>
    %209 = arith.addf %201, %208 : vector<8x512xf32>
    %c441_i32 = arith.constant 441 : i32
    %210 = tpu.dynamic_rotate %17 by %c441_i32 dim 1 : vector<8x512xf32>, i32 -> vector<8x512xf32>
    %c24 = arith.constant 24 : index
    %c0_135 = arith.constant 0 : index
    %211 = vector.load %arg6[%c24, %c0_135] : memref<27x512xf32, #tpu.memory_space<vmem>>, vector<1x512xf32>
    %212 = vector.broadcast %211 : vector<1x512xf32> to vector<8x512xf32>
    %213 = arith.mulf %210, %212 : vector<8x512xf32>
    %c24_136 = arith.constant 24 : index
    %c0_137 = arith.constant 0 : index
    %c0_138 = arith.constant 0 : index
    %214 = vector.load %arg4[%c24_136, %c0_137, %c0_138] : memref<27x8x8xf32, #tpu.memory_space<vmem>>, vector<1x8x8xf32>
    %215 = vector.shape_cast %214 : vector<1x8x8xf32> to vector<8x8xf32>
    %cst_139 = arith.constant dense<0.000000e+00> : vector<8x512xf32>
    %216 = tpu.matmul %215, %213, %cst_139 {dimension_numbers = #tpu.dot_dimension_numbers<[1], [0], [0], [1], [0, 0, 1, 1], [], []>} : vector<8x8xf32>, vector<8x512xf32>, vector<8x512xf32> -> vector<8x512xf32>
    %217 = arith.addf %209, %216 : vector<8x512xf32>
    %c440_i32 = arith.constant 440 : i32
    %218 = tpu.dynamic_rotate %17 by %c440_i32 dim 1 : vector<8x512xf32>, i32 -> vector<8x512xf32>
    %c25 = arith.constant 25 : index
    %c0_140 = arith.constant 0 : index
    %219 = vector.load %arg6[%c25, %c0_140] : memref<27x512xf32, #tpu.memory_space<vmem>>, vector<1x512xf32>
    %220 = vector.broadcast %219 : vector<1x512xf32> to vector<8x512xf32>
    %221 = arith.mulf %218, %220 : vector<8x512xf32>
    %c25_141 = arith.constant 25 : index
    %c0_142 = arith.constant 0 : index
    %c0_143 = arith.constant 0 : index
    %222 = vector.load %arg4[%c25_141, %c0_142, %c0_143] : memref<27x8x8xf32, #tpu.memory_space<vmem>>, vector<1x8x8xf32>
    %223 = vector.shape_cast %222 : vector<1x8x8xf32> to vector<8x8xf32>
    %cst_144 = arith.constant dense<0.000000e+00> : vector<8x512xf32>
    %224 = tpu.matmul %223, %221, %cst_144 {dimension_numbers = #tpu.dot_dimension_numbers<[1], [0], [0], [1], [0, 0, 1, 1], [], []>} : vector<8x8xf32>, vector<8x512xf32>, vector<8x512xf32> -> vector<8x512xf32>
    %225 = arith.addf %217, %224 : vector<8x512xf32>
    %c439_i32 = arith.constant 439 : i32
    %226 = tpu.dynamic_rotate %17 by %c439_i32 dim 1 : vector<8x512xf32>, i32 -> vector<8x512xf32>
    %c26 = arith.constant 26 : index
    %c0_145 = arith.constant 0 : index
    %227 = vector.load %arg6[%c26, %c0_145] : memref<27x512xf32, #tpu.memory_space<vmem>>, vector<1x512xf32>
    %228 = vector.broadcast %227 : vector<1x512xf32> to vector<8x512xf32>
    %229 = arith.mulf %226, %228 : vector<8x512xf32>
    %c26_146 = arith.constant 26 : index
    %c0_147 = arith.constant 0 : index
    %c0_148 = arith.constant 0 : index
    %230 = vector.load %arg4[%c26_146, %c0_147, %c0_148] : memref<27x8x8xf32, #tpu.memory_space<vmem>>, vector<1x8x8xf32>
    %231 = vector.shape_cast %230 : vector<1x8x8xf32> to vector<8x8xf32>
    %cst_149 = arith.constant dense<0.000000e+00> : vector<8x512xf32>
    %232 = tpu.matmul %231, %229, %cst_149 {dimension_numbers = #tpu.dot_dimension_numbers<[1], [0], [0], [1], [0, 0, 1, 1], [], []>} : vector<8x8xf32>, vector<8x512xf32>, vector<8x512xf32> -> vector<8x512xf32>
    %233 = arith.addf %225, %232 : vector<8x512xf32>
    %c0_150 = arith.constant 0 : index
    %c0_151 = arith.constant 0 : index
    %234 = vector.load %arg5[%c0_150, %c0_151] : memref<8x1xf32, #tpu.memory_space<vmem>>, vector<8x1xf32>
    %235 = vector.broadcast %234 : vector<8x1xf32> to vector<8x512xf32>
    %236 = arith.addf %233, %235 : vector<8x512xf32>
    %c0_152 = arith.constant 0 : index
    %c4_153 = arith.constant 4 : index
    %c0_154 = arith.constant 0 : index
    %237 = vector.load %arg7[%c0_152, %c4_153, %c0_154] : memref<1x12x512xf32, #tpu.memory_space<vmem>>, vector<1x8x512xf32>
    %238 = vector.shape_cast %237 : vector<1x8x512xf32> to vector<8x512xf32>
    %239 = vector.shape_cast %236 : vector<8x512xf32> to vector<1x8x512xf32>
    tpu.vector_store %arg7[%c0_152, %c4_153, %c0_154], %239 {strides = array<i32>} : memref<1x12x512xf32, #tpu.memory_space<vmem>>, vector<1x8x512xf32>,
    return
  }
  func.func @transform_0(%arg0: i32) -> (i32, i32, i32) {
    %c0_i32 = arith.constant 0 : i32
    %c0_i32_0 = arith.constant 0 : i32
    %c0_i32_1 = arith.constant 0 : i32
    return %arg0, %c0_i32, %c0_i32_0 : i32, i32, i32
  }
  func.func @transform_1(%arg0: i32) -> (i32, i32) {
    %c0_i32 = arith.constant 0 : i32
    %c0_i32_0 = arith.constant 0 : i32
    %c0_i32_1 = arith.constant 0 : i32
    return %c0_i32, %c0_i32_0 : i32, i32
  }
  func.func @transform_2(%arg0: i32) -> (i32, i32) {
    %c0_i32 = arith.constant 0 : i32
    %c0_i32_0 = arith.constant 0 : i32
    %c0_i32_1 = arith.constant 0 : i32
    return %c0_i32, %c0_i32_0 : i32, i32
  }
  func.func @transform_3(%arg0: i32) -> (i32, i32, i32) {
    %c0_i32 = arith.constant 0 : i32
    %c0_i32_0 = arith.constant 0 : i32
    %c0_i32_1 = arith.constant 0 : i32
    %c0_i32_2 = arith.constant 0 : i32
    return %c0_i32, %c0_i32_0, %c0_i32_1 : i32, i32, i32
  }
  func.func @transform_4(%arg0: i32) -> (i32, i32) {
    %c0_i32 = arith.constant 0 : i32
    %c0_i32_0 = arith.constant 0 : i32
    %c0_i32_1 = arith.constant 0 : i32
    return %c0_i32, %c0_i32_0 : i32, i32
  }
  func.func @transform_5(%arg0: i32) -> (i32, i32) {
    %c0_i32 = arith.constant 0 : i32
    %c0_i32_0 = arith.constant 0 : i32
    %c0_i32_1 = arith.constant 0 : i32
    return %c0_i32, %c0_i32_0 : i32, i32
  }
  func.func @transform_6(%arg0: i32) -> (i32, i32, i32) {
    %c0_i32 = arith.constant 0 : i32
    %c0_i32_0 = arith.constant 0 : i32
    %c0_i32_1 = arith.constant 0 : i32
    return %arg0, %c0_i32, %c0_i32_0 : i32, i32, i32
  }
}

</mosaic_0001>

<bundles_post_ra>
// kernel: tpu_custom_call.1
= control target key start
LH: loop header
LB: loop body
LE: loop exit
PB: predicated region body
PF: predicated region fallthrough
CT: control target
= control target key end

     0   :  { %s5610_s21 = smov 0   ;;  %s6515_s0 = inlined_call_operand.vmem [shape: f32[2,8,512], index: 0, kind: input, shape index: {}]   ;;  %s6516_s1 = inlined_call_operand.vmem [shape: f32[8,1], index: 1, kind: input, shape index: {}]   ;;  %s6517_s2 = inlined_call_operand.vmem [shape: f32[8,1], index: 2, kind: input, shape index: {}]   ;;  %s6518_s3 = inlined_call_operand.vmem [shape: f32[27,8,8], index: 3, kind: input, shape index: {}]   ;;  %s6519_s4 = inlined_call_operand.vmem [shape: f32[8,1], index: 4, kind: input, shape index: {}]   ;;  %s6520_s5 = inlined_call_operand.vmem [shape: f32[27,512], index: 5, kind: input, shape index: {}]   ;;  %s6521_s6 = inlined_call_operand.vmem [shape: f32[2,12,512], index: 6, kind: output, shape index: {}]  }
   0x1 LB: > { %s5401_s22 = sadd.s32 4294967295, %s5554_s21   ;;  %p5405_p0 = scmp.ge.s32.totalorder %s5554_s21, 1  ;;  %s5554_s21 = sphi %s5610_s21, %s16_s21  }
   0x2   : > { %p212_p1 = scmp.lt.s32.totalorder %s5554_s21, 3 }
   0x4   : > { %p213_p2 = pnand %p5405_p0, %p212_p1 }
   0x6   : > { %216 = sbr.rel (%p213_p2) target bundleno = 640 (0x280), region = 44 }
   0xb   : > { %v264_v0 = vld [vmem:[%s6516_s1] sm:$0xff]  ;;  %p242_p3 = scmp.lt.s32.totalorder %s5401_s22, 1  ;;  %v5556_v1 = vmov 0   ;;  %s5557_s11 = smov 72   ;;  %v6522_v28 = vmov 0.0   ;;  %v304_v30 = vlaneseq  ;;  %v5411_v57 = vld [vmem:[%s6518_s3 + $0x8] sm:$0xff] }
   0xc   : > { %5547 = vset.pattern.permute.xlu0 %v5556_v1  ;;  %v274_v2 = vld [vmem:[%s6517_s2] sm:$0xff]  ;;  %s5558_s12 = smov 73   ;;  %448 = vmatprep.mubr.f32.mxu0 %v6522_v28  ;;  %s5560_s13 = smov 71   ;;  %vm380_vm6 = vcmask 64512  }
   0xd   : > { %267 = vperm.xlu0 %5547, %v264_v0   ;;  %s6548_s22 = smov (!%p242_p3, %s5401_s22), 1  ;;  %519 = vmatprep.mubr.f32.mxu1 %v6522_v28  ;;  %s5561_s14 = smov 65   ;;  %v314_v31 = vshrl.u32 %v304_v30, 7  ;;  %v5704_v32 = vand.u32 127, %v304_v30 }
   0xe   : > { %s5518_s27 = sshll.u32 %s6548_s22, 5  ;;  %s5519_s28 = sshll.u32 %s6548_s22, 6  ;;  %v5410_v33 = vld [vmem:[%s6520_s5 + $0x1] ss:$8 sm:$0xf] }
   0xf   : > { %s246_s7 = scalar_lea.vmem %s6515_s0, %s5518_s27  ;;  %s5630_s10 = scalar_lea.vmem %s6521_s6, %s5519_s28  ;;  %v5709_v36 = vsub.s32 1, %v314_v31  ;;  %vm346_vm4 = vcmp.lt.s32.totalorder %v5704_v32, 72  ;;  %v5716_v40 = vsub.s32 0, %v314_v31  ;;  %v5718_v41 = vsub.s32 3, %v314_v31 }
  0x10   : > { %v252_v3 = vld [vmem:[%s246_s7] sm:$0xf]  ;;  %v253_v4 = vld [vmem:[%s246_s7 + $0x8] sm:$0xf]  ;;  %v254_v5 = vld [vmem:[%s246_s7 + $0x10] sm:$0xf] }
  0x11   : > { %277 = vperm.xlu0 %5547, %v274_v2   ;;  %v255_v6 = vld [vmem:[%s246_s7 + $0x18] sm:$0xf]  ;;  %256 = vst [vmem:[%s5630_s10] sm:$0xf] %v252_v3  ;;  %257 = vst [vmem:[%s5630_s10 + $0x8] sm:$0xf] %v253_v4  ;;  %v260_v8 = vld [vmem:[%s246_s7] sm:$0xff]  ;;  %v361_v37 = vrot.slane %v5410_v33, %v5709_v36  ;;  %v357_v45 = vrot.slane %v5410_v33, %v5716_v40  ;;  %v369_v46 = vrot.slane %v5410_v33, %v5718_v41 }
  0x12   : > { %258 = vst [vmem:[%s5630_s10 + $0x10] sm:$0xf] %v254_v5  ;;  %259 = vst [vmem:[%s5630_s10 + $0x18] sm:$0xf] %v255_v6  ;;  %v262_v9 = vld [vmem:[%s246_s7 + $0x10] sm:$0xff]  ;;  %v261_v10 = vld [vmem:[%s246_s7 + $0x8] sm:$0xff] }
  0x13   : > { %v263_v15 = vld [vmem:[%s246_s7 + $0x18] sm:$0xff]  ;;  %s5562_s15 = smov 64   ;;  %s5563_s16 = smov 63   ;;  %v5720_v42 = vsub.s32 2, %v314_v31  ;;  %vm306_vm5 = vcmp.lt.s32.totalorder %v5704_v32, 73  ;;  %v5316_v2 = vld [vmem:[%s6519_s4] sm:$0xff] }
  0x14   : > { %s5564_s17 = smov 57   ;;  %s5565_s18 = smov 56   ;;  %v311_v47 = vld [vmem:[%s6520_s5] ss:$8 sm:$0xf]  ;;  %vm679_vm7 = vcmp.lt.s32.totalorder %v5704_v32, 71 }
  0x15   : > { %s5566_s19 = smov 55   ;;  %s5567_s20 = smov 9   ;;  %v365_v48 = vrot.slane %v5410_v33, %v5720_v42  ;;  %v320_v56 = vrot.slane %v311_v47, %v5709_v36  ;;  %v316_v63 = vrot.slane %v311_v47, %v5716_v40  ;;  %v328_v0 = vrot.slane %v311_v47, %v5718_v41  ;;  %v5416_v3 = vld [vmem:[%s6520_s5 + $0x2] ss:$8 sm:$0xf] }
  0x16   : > { %s5568_s22 = smov 8   ;;  %s5569_s23 = smov 7   ;;  %v324_v1 = vrot.slane %v311_v47, %v5720_v42  ;;  %vm870_vm8 = vcmp.lt.s32.totalorder %v5704_v32, 65  ;;  %vm1061_vm9 = vcmp.lt.s32.totalorder %v5704_v32, 64  ;;  %vm1252_vm10 = vcmp.lt.s32.totalorder %v5704_v32, 63 }
  0x17   : > { %s5570_s24 = smov 1   ;;  %s5571_s25 = smov 127   ;;  %vm1443_vm11 = vcmp.lt.s32.totalorder %v5704_v32, 57  ;;  %vm1634_vm12 = vcmp.lt.s32.totalorder %v5704_v32, 56  ;;  %vm1825_vm13 = vcmp.lt.s32.totalorder %v5704_v32, 55  ;;  %vm2016_vm14 = vcmp.lt.s32.totalorder %v5704_v32, 9 }
  0x18   : > { %s5572_s26 = smov 121   ;;  %s5573_s29 = smov 120   ;;  %vm2207_vm15 = vcmp.lt.s32.totalorder %v5704_v32, 8 }
  0x19   : > { %s5574_s8 = smov 119  }
  0x88   : > { %v268_v7 = vpop.permute.xlu0 %267 }
  0x89   : > { %v270_v11 = vmul.f32 %v268_v7, %v260_v8  ;;  %v272_v12 = vmul.f32 %v268_v7, %v262_v9  ;;  %v271_v13 = vmul.f32 %v268_v7, %v261_v10  ;;  %v273_v19 = vmul.f32 %v268_v7, %v263_v15 }
  0x8c   : > { %v278_v14 = vpop.permute.xlu0 %277 }
  0x8d   : > { %v280_v16 = vadd.f32 %v278_v14, %v270_v11  ;;  %v282_v17 = vadd.f32 %v278_v14, %v272_v12  ;;  %v281_v18 = vadd.f32 %v278_v14, %v271_v13  ;;  %v283_v22 = vadd.f32 %v278_v14, %v273_v19  ;;  %v337_v12 = vld [vmem:[%s6518_s3] sm:$0xff] }
  0x8e   : > { %v694_v11 = vrot.slane %v5416_v3, %v5709_v36  ;;  %v702_v19 = vrot.slane %v5416_v3, %v5718_v41 }
  0x8f   : > { %vm284_vm0 = vcmp.ge.f32.partialorder %v280_v16, 0.0  ;;  %vm286_vm1 = vcmp.ge.f32.partialorder %v282_v17, 0.0  ;;  %v288_v20 = vmul.f32 0.01, %v280_v16  ;;  %v290_v21 = vmul.f32 0.01, %v282_v17 }
  0x90   : > { %v289_v23 = vmul.f32 0.01, %v281_v18  ;;  %vm285_vm2 = vcmp.ge.f32.partialorder %v281_v18, 0.0  ;;  %v291_v26 = vmul.f32 0.01, %v283_v22  ;;  %vm287_vm3 = vcmp.ge.f32.partialorder %v283_v22, 0.0 }
  0x91   : > { %v5636_v24 = vsel %vm284_vm0, %v280_v16, %v288_v20  ;;  %v5638_v25 = vsel %vm286_vm1, %v282_v17, %v290_v21  ;;  %v698_v20 = vrot.slane %v5416_v3, %v5720_v42  ;;  %v5420_v21 = vld [vmem:[%s6520_s5 + $0x3] ss:$8 sm:$0xf]  ;;  %vm2398_vm0 = vcmp.lt.s32.totalorder %v5704_v32, 7 }
  0x92   : > { %342 = vrot.lane.b32.xlu0 %v5638_v25, %s5557_s11  ;;  %338 = vrot.lane.b32.xlu1 %v5636_v24, %s5557_s11  ;;  %v5642_v27 = vsel %vm285_vm2, %v281_v18, %v289_v23  ;;  %v5648_v29 = vsel %vm287_vm3, %v283_v22, %v291_v26  ;;  %v690_v18 = vrot.slane %v5416_v3, %v5716_v40  ;;  %vm2589_vm1 = vcmp.lt.s32.totalorder %v5704_v32, 1 }
  0x93   : > { %v881_v47 = vrot.slane %v5420_v21, %v5716_v40  ;;  %vm2958_vm2 = vcmp.lt.s32.totalorder %v5704_v32, 127  ;;  %vm3149_vm3 = vcmp.lt.s32.totalorder %v5704_v32, 121 }
  0x96   : > { %296 = vrot.lane.b32.xlu0 %v5636_v24, %s5558_s12  ;;  %340 = vrot.lane.b32.xlu1 %v5642_v27, %s5557_s11 }
  0x9a   : > { %300 = vrot.lane.b32.xlu0 %v5638_v25, %s5558_s12  ;;  %344 = vrot.lane.b32.xlu1 %v5648_v29, %s5557_s11 }
  0x9e   : > { %671 = vrot.lane.b32.xlu0 %v5636_v24, %s5560_s13  ;;  %298 = vrot.lane.b32.xlu1 %v5642_v27, %s5558_s12 }
  0xa2   : > { %675 = vrot.lane.b32.xlu0 %v5638_v25, %s5560_s13  ;;  %302 = vrot.lane.b32.xlu1 %v5648_v29, %s5558_s12 }
  0xa6   : > { %862 = vrot.lane.b32.xlu0 %v5636_v24, %s5561_s14  ;;  %673 = vrot.lane.b32.xlu1 %v5642_v27, %s5560_s13 }
  0xaa   : > { %866 = vrot.lane.b32.xlu0 %v5638_v25, %s5561_s14  ;;  %677 = vrot.lane.b32.xlu1 %v5648_v29, %s5560_s13 }
  0xae   : > { %1053 = vrot.lane.b32.xlu0 %v5636_v24, %s5562_s15  ;;  %864 = vrot.lane.b32.xlu1 %v5642_v27, %s5561_s14 }
  0xb2   : > { %1057 = vrot.lane.b32.xlu0 %v5638_v25, %s5562_s15  ;;  %868 = vrot.lane.b32.xlu1 %v5648_v29, %s5561_s14 }
  0xb6   : > { %1244 = vrot.lane.b32.xlu0 %v5636_v24, %s5563_s16  ;;  %1055 = vrot.lane.b32.xlu1 %v5642_v27, %s5562_s15 }
  0xba   : > { %1248 = vrot.lane.b32.xlu0 %v5638_v25, %s5563_s16  ;;  %1059 = vrot.lane.b32.xlu1 %v5648_v29, %s5562_s15 }
  0xbe   : > { %1435 = vrot.lane.b32.xlu0 %v5636_v24, %s5564_s17  ;;  %1246 = vrot.lane.b32.xlu1 %v5642_v27, %s5563_s16 }
  0xc2   : > { %1439 = vrot.lane.b32.xlu0 %v5638_v25, %s5564_s17  ;;  %1250 = vrot.lane.b32.xlu1 %v5648_v29, %s5563_s16 }
  0xc6   : > { %1626 = vrot.lane.b32.xlu0 %v5636_v24, %s5565_s18  ;;  %1437 = vrot.lane.b32.xlu1 %v5642_v27, %s5564_s17 }
  0xca   : > { %1630 = vrot.lane.b32.xlu0 %v5638_v25, %s5565_s18  ;;  %1441 = vrot.lane.b32.xlu1 %v5648_v29, %s5564_s17 }
  0xce   : > { %1817 = vrot.lane.b32.xlu0 %v5636_v24, %s5566_s19  ;;  %1628 = vrot.lane.b32.xlu1 %v5642_v27, %s5565_s18 }
  0xd2   : > { %1821 = vrot.lane.b32.xlu0 %v5638_v25, %s5566_s19  ;;  %1632 = vrot.lane.b32.xlu1 %v5648_v29, %s5565_s18 }
  0xd6   : > { %2008 = vrot.lane.b32.xlu0 %v5636_v24, %s5567_s20  ;;  %1819 = vrot.lane.b32.xlu1 %v5642_v27, %s5566_s19 }
  0xda   : > { %2012 = vrot.lane.b32.xlu0 %v5638_v25, %s5567_s20  ;;  %1823 = vrot.lane.b32.xlu1 %v5648_v29, %s5566_s19 }
  0xde   : > { %2199 = vrot.lane.b32.xlu0 %v5636_v24, %s5568_s22  ;;  %2010 = vrot.lane.b32.xlu1 %v5642_v27, %s5567_s20 }
  0xe2   : > { %2203 = vrot.lane.b32.xlu0 %v5638_v25, %s5568_s22  ;;  %2014 = vrot.lane.b32.xlu1 %v5648_v29, %s5567_s20 }
  0xe6   : > { %2390 = vrot.lane.b32.xlu0 %v5636_v24, %s5569_s23  ;;  %2201 = vrot.lane.b32.xlu1 %v5642_v27, %s5568_s22 }
  0xea   : > { %2394 = vrot.lane.b32.xlu0 %v5638_v25, %s5569_s23  ;;  %2205 = vrot.lane.b32.xlu1 %v5648_v29, %s5568_s22 }
  0xee   : > { %2581 = vrot.lane.b32.xlu0 %v5636_v24, %s5570_s24  ;;  %2392 = vrot.lane.b32.xlu1 %v5642_v27, %s5569_s23 }
  0xf2   : > { %2585 = vrot.lane.b32.xlu0 %v5638_v25, %s5570_s24  ;;  %2396 = vrot.lane.b32.xlu1 %v5648_v29, %s5569_s23 }
  0xf6   : > { %2950 = vrot.lane.b32.xlu0 %v5636_v24, %s5571_s25  ;;  %2583 = vrot.lane.b32.xlu1 %v5642_v27, %s5570_s24 }
  0xfa   : > { %2954 = vrot.lane.b32.xlu0 %v5638_v25, %s5571_s25  ;;  %2587 = vrot.lane.b32.xlu1 %v5648_v29, %s5570_s24 }
  0xfe   : > { %3141 = vrot.lane.b32.xlu0 %v5636_v24, %s5572_s26  ;;  %2952 = vrot.lane.b32.xlu1 %v5642_v27, %s5571_s25 }
 0x102   : > { %3145 = vrot.lane.b32.xlu0 %v5638_v25, %s5572_s26  ;;  %2956 = vrot.lane.b32.xlu1 %v5648_v29, %s5571_s25 }
 0x104   : > { %v343_v34 = vpop.permute.xlu0 %342  ;;  %v339_v35 = vpop.permute.xlu1 %338 }
 0x106   : > { %3332 = vrot.lane.b32.xlu0 %v5636_v24, %s5573_s29  ;;  %3143 = vrot.lane.b32.xlu1 %v5642_v27, %s5572_s26 }
 0x108   : > { %v297_v38 = vpop.permute.xlu0 %296  ;;  %v341_v39 = vpop.permute.xlu1 %340 }
 0x109   : > { %v5724_v43 = vsel %vm346_vm4, %v339_v35, %v341_v39  ;;  %v5738_v49 = vsel %vm346_vm4, %v341_v39, %v343_v34 }
 0x10a   : > { %3336 = vrot.lane.b32.xlu0 %v5638_v25, %s5573_s29  ;;  %3147 = vrot.lane.b32.xlu1 %v5648_v29, %s5572_s26  ;;  %v375_v44 = vmul.f32 %v361_v37, %v5724_v43  ;;  %v376_v58 = vmul.f32 %v365_v48, %v5738_v49  ;;  %v5417_v37 = vld [vmem:[%s6518_s3 + $0x10] sm:$0xff]  ;;  %v893_v48 = vrot.slane %v5420_v21, %v5718_v41 }
 0x10c   : > { %v301_v50 = vpop.permute.xlu0 %300  ;;  %414 = vmatprep.subr.mxu0 %v375_v44  ;;  %v345_v51 = vpop.permute.xlu1 %344 }
 0x10d   : > { %v5742_v52 = vsel %vm346_vm4, %v345_v51, %v339_v35  ;;  %v5746_v53 = vsel %vm346_vm4, %v343_v34, %v345_v51  ;;  %v885_v35 = vrot.slane %v5420_v21, %v5709_v36  ;;  %v5424_v51 = vld [vmem:[%s6520_s5 + $0x4] ss:$8 sm:$0xf]  ;;  %vm3340_vm4 = vcmp.lt.s32.totalorder %v5704_v32, 120 }
 0x10e   : > { %3523 = vrot.lane.b32.xlu0 %v5636_v24, %s5574_s8  ;;  %3334 = vrot.lane.b32.xlu1 %v5642_v27, %s5573_s29  ;;  %v374_v54 = vmul.f32 %v357_v45, %v5742_v52  ;;  %v377_v55 = vmul.f32 %v369_v46, %v5746_v53 }
 0x110   : > { %v672_v59 = vpop.permute.xlu0 %671  ;;  %415 = vmatpush1.msra.mxu0 %v374_v54  ;;  %485 = vmatprep.subr.mxu1 %v377_v55  ;;  %v299_v60 = vpop.permute.xlu1 %298 }
 0x111   : > { %v5762_v61 = vsel %vm306_vm5, %v297_v38, %v299_v60  ;;  %486 = vmatpush1.msra.mxu1 %v376_v58  ;;  %5412 = vmatmul.mubr.msk.f32.vlgmr.msra.gmra.mxu0 %vm380_vm6, %v5411_v57  ;;  %v5782_v4 = vsel %vm306_vm5, %v299_v60, %v301_v50 }
 0x112   : > { %v334_v62 = vmul.f32 %v320_v56, %v5762_v61  ;;  %3527 = vrot.lane.b32.xlu0 %v5638_v25, %s5574_s8  ;;  %3338 = vrot.lane.b32.xlu1 %v5648_v29, %s5573_s29  ;;  %v335_v13 = vmul.f32 %v324_v1, %v5782_v4 }
 0x113   : > { %5413 = vmatmul.mubr.msk.f32.vlgmr.msra.gmra.mxu1 %vm380_vm6, %v5411_v57  ;;  %593 = vmatprep.mubr.f32.mxu0 %v6522_v28 }
 0x114   : > { %v676_v5 = vpop.permute.xlu0 %675  ;;  %559 = vmatprep.subr.mxu0 %v334_v62  ;;  %v303_v6 = vpop.permute.xlu1 %302  ;;  %664 = vmatprep.mubr.f32.mxu1 %v6522_v28  ;;  %v1076_v62 = vrot.slane %v5424_v51, %v5709_v36 }
 0x115   : > { %v5787_v7 = vsel %vm306_vm5, %v301_v50, %v303_v6  ;;  %v5791_v8 = vsel %vm306_vm5, %v303_v6, %v297_v38  ;;  %v889_v50 = vrot.slane %v5420_v21, %v5720_v42  ;;  %v1072_v6 = vrot.slane %v5424_v51, %v5716_v40  ;;  %v5425_v21 = vld [vmem:[%s6518_s3 + $0x20] sm:$0xff] }
 0x116   : > { %v333_v9 = vmul.f32 %v316_v63, %v5791_v8  ;;  %v336_v10 = vmul.f32 %v328_v0, %v5787_v7  ;;  %5319 = vperm.xlu0 %5547, %v5316_v2   ;;  %3525 = vrot.lane.b32.xlu1 %v5642_v27, %s5574_s8  ;;  %v5421_v63 = vld [vmem:[%s6518_s3 + $0x18] sm:$0xff]  ;;  %vm3531_vm5 = vcmp.lt.s32.totalorder %v5704_v32, 119 }
 0x117   : > { %v5492_v32 = vld [vmem:[%s6520_s5 + $0x45] ss:$8 sm:$0xf] }
 0x118   : > { %v863_v14 = vpop.permute.xlu0 %862  ;;  %560 = vmatpush1.msra.mxu0 %v333_v9  ;;  %630 = vmatprep.subr.mxu1 %v336_v10  ;;  %v674_v15 = vpop.permute.xlu1 %673  ;;  %v1084_v9 = vrot.slane %v5424_v51, %v5718_v41  ;;  %v1080_v10 = vrot.slane %v5424_v51, %v5720_v42 }
 0x119   : > { %v5806_v16 = vsel %vm679_vm7, %v672_v59, %v674_v15  ;;  %631 = vmatpush1.msra.mxu1 %v335_v13  ;;  %5414 = vmatmul.mubr.msk.f32.vlgmr.msra.gmra.mxu0 %vm380_vm6, %v337_v12  ;;  %v5822_v22 = vsel %vm679_vm7, %v674_v15, %v676_v5 }
 0x11a   : > { %v708_v17 = vmul.f32 %v694_v11, %v5806_v16  ;;  %5415 = vmatmul.mubr.msk.f32.vlgmr.msra.gmra.mxu1 %vm380_vm6, %v337_v12  ;;  %3529 = vrot.lane.b32.xlu1 %v5648_v29, %s5574_s8  ;;  %v709_v38 = vmul.f32 %v698_v20, %v5822_v22  ;;  %v5428_v11 = vld [vmem:[%s6520_s5 + $0x5] ss:$8 sm:$0xf] }
 0x11b   : > { %780 = vmatprep.mubr.f32.mxu0 %v6522_v28  ;;  %851 = vmatprep.mubr.f32.mxu1 %v6522_v28  ;;  %v1267_v20 = vrot.slane %v5428_v11, %v5709_v36 }
 0x11c   : > { %v867_v23 = vpop.permute.xlu0 %866  ;;  %746 = vmatprep.subr.mxu0 %v708_v17  ;;  %v678_v26 = vpop.permute.xlu1 %677 }
 0x11d   : > { %v5827_v30 = vsel %vm679_vm7, %v676_v5, %v678_v26  ;;  %v5831_v31 = vsel %vm679_vm7, %v678_v26, %v672_v59 }
 0x11e   : > { %v707_v33 = vmul.f32 %v690_v18, %v5831_v31  ;;  %v710_v34 = vmul.f32 %v702_v19, %v5827_v30 }
 0x120   : > { %v1054_v39 = vpop.permute.xlu0 %1053  ;;  %747 = vmatpush1.msra.mxu0 %v707_v33  ;;  %817 = vmatprep.subr.mxu1 %v710_v34  ;;  %v865_v44 = vpop.permute.xlu1 %864 }
 0x121   : > { %v5843_v45 = vsel %vm870_vm8, %v863_v14, %v865_v44  ;;  %818 = vmatpush1.msra.mxu1 %v709_v38  ;;  %5418 = vmatmul.mubr.msk.f32.vlgmr.msra.gmra.mxu0 %vm380_vm6, %v5417_v37  ;;  %v5858_v54 = vsel %vm870_vm8, %v865_v44, %v867_v23  ;;  %v1275_v38 = vrot.slane %v5428_v11, %v5718_v41  ;;  %v5432_v44 = vld [vmem:[%s6520_s5 + $0x6] ss:$8 sm:$0xf] }
 0x122   : > { %v899_v46 = vmul.f32 %v885_v35, %v5843_v45  ;;  %5419 = vmatmul.mubr.msk.f32.vlgmr.msra.gmra.mxu1 %vm380_vm6, %v5417_v37  ;;  %971 = vmatprep.mubr.f32.mxu0 %v6522_v28  ;;  %v900_v0 = vmul.f32 %v889_v50, %v5858_v54  ;;  %v1263_v37 = vrot.slane %v5428_v11, %v5716_v40 }
 0x123   : > { %1042 = vmatprep.mubr.f32.mxu1 %v6522_v28 }
 0x124   : > { %v1058_v55 = vpop.permute.xlu0 %1057  ;;  %937 = vmatprep.subr.mxu0 %v899_v46  ;;  %v869_v56 = vpop.permute.xlu1 %868 }
 0x125   : > { %v5862_v57 = vsel %vm870_vm8, %v867_v23, %v869_v56  ;;  %v5866_v58 = vsel %vm870_vm8, %v869_v56, %v863_v14 }
 0x126   : > { %v898_v59 = vmul.f32 %v881_v47, %v5866_v58  ;;  %v901_v60 = vmul.f32 %v893_v48, %v5862_v57 }
 0x128   : > { %v1245_v1 = vpop.permute.xlu0 %1244  ;;  %938 = vmatpush1.msra.mxu0 %v898_v59  ;;  %1008 = vmatprep.subr.mxu1 %v901_v60  ;;  %v1056_v2 = vpop.permute.xlu1 %1055  ;;  %v1458_v59 = vrot.slane %v5432_v44, %v5709_v36  ;;  %v5429_v60 = vld [vmem:[%s6518_s3 + $0x28] sm:$0xff] }
 0x129   : > { %v5878_v3 = vsel %vm1061_vm9, %v1054_v39, %v1056_v2  ;;  %1009 = vmatpush1.msra.mxu1 %v900_v0  ;;  %5422 = vmatmul.mubr.msk.f32.vlgmr.msra.gmra.mxu0 %vm380_vm6, %v5421_v63  ;;  %v5893_v12 = vsel %vm1061_vm9, %v1056_v2, %v1058_v55 }
 0x12a   : > { %v1090_v5 = vmul.f32 %v1076_v62, %v5878_v3  ;;  %5423 = vmatmul.mubr.msk.f32.vlgmr.msra.gmra.mxu1 %vm380_vm6, %v5421_v63  ;;  %1162 = vmatprep.mubr.f32.mxu0 %v6522_v28  ;;  %v1091_v23 = vmul.f32 %v1080_v10, %v5893_v12  ;;  %v5436_v10 = vld [vmem:[%s6520_s5 + $0x7] ss:$8 sm:$0xf] }
 0x12b   : > { %1233 = vmatprep.mubr.f32.mxu1 %v6522_v28 }
 0x12c   : > { %v1249_v13 = vpop.permute.xlu0 %1248  ;;  %1128 = vmatprep.subr.mxu0 %v1090_v5  ;;  %v1060_v14 = vpop.permute.xlu1 %1059  ;;  %v1454_v5 = vrot.slane %v5432_v44, %v5716_v40 }
 0x12d   : > { %v5897_v15 = vsel %vm1061_vm9, %v1058_v55, %v1060_v14  ;;  %v5901_v17 = vsel %vm1061_vm9, %v1060_v14, %v1054_v39  ;;  %v1271_v39 = vrot.slane %v5428_v11, %v5720_v42 }
 0x12e   : > { %v1089_v18 = vmul.f32 %v1072_v6, %v5901_v17  ;;  %v1092_v19 = vmul.f32 %v1084_v9, %v5897_v15  ;;  %v1466_v6 = vrot.slane %v5432_v44, %v5718_v41  ;;  %v1462_v9 = vrot.slane %v5432_v44, %v5720_v42 }
 0x12f   : > { %v1645_v44 = vrot.slane %v5436_v10, %v5716_v40 }
 0x130   : > { %v1436_v26 = vpop.permute.xlu0 %1435  ;;  %1129 = vmatpush1.msra.mxu0 %v1089_v18  ;;  %1199 = vmatprep.subr.mxu1 %v1092_v19  ;;  %v1247_v33 = vpop.permute.xlu1 %1246 }
 0x131   : > { %v5913_v34 = vsel %vm1252_vm10, %v1245_v1, %v1247_v33  ;;  %1200 = vmatpush1.msra.mxu1 %v1091_v23  ;;  %5426 = vmatmul.mubr.msk.f32.vlgmr.msra.gmra.mxu0 %vm380_vm6, %v5425_v21  ;;  %v5928_v46 = vsel %vm1252_vm10, %v1247_v33, %v1249_v13  ;;  %v1649_v23 = vrot.slane %v5436_v10, %v5709_v36  ;;  %v5433_v33 = vld [vmem:[%s6518_s3 + $0x30] sm:$0xff] }
 0x132   : > { %v1281_v35 = vmul.f32 %v1267_v20, %v5913_v34  ;;  %5427 = vmatmul.mubr.msk.f32.vlgmr.msra.gmra.mxu1 %vm380_vm6, %v5425_v21  ;;  %1353 = vmatprep.mubr.f32.mxu0 %v6522_v28  ;;  %v1282_v62 = vmul.f32 %v1271_v39, %v5928_v46 }
 0x133   : > { %1424 = vmatprep.mubr.f32.mxu1 %v6522_v28 }
 0x134   : > { %v1440_v47 = vpop.permute.xlu0 %1439  ;;  %1319 = vmatprep.subr.mxu0 %v1281_v35  ;;  %v1251_v48 = vpop.permute.xlu1 %1250 }
 0x135   : > { %v5932_v50 = vsel %vm1252_vm10, %v1249_v13, %v1251_v48  ;;  %v5936_v51 = vsel %vm1252_vm10, %v1251_v48, %v1245_v1  ;;  %v1653_v48 = vrot.slane %v5436_v10, %v5720_v42 }
 0x136   : > { %v1280_v55 = vmul.f32 %v1263_v37, %v5936_v51  ;;  %v1283_v56 = vmul.f32 %v1275_v38, %v5932_v50 }
 0x138   : > { %v1627_v63 = vpop.permute.xlu0 %1626  ;;  %1320 = vmatpush1.msra.mxu0 %v1280_v55  ;;  %1390 = vmatprep.subr.mxu1 %v1283_v56  ;;  %v1438_v0 = vpop.permute.xlu1 %1437  ;;  %v5440_v55 = vld [vmem:[%s6520_s5 + $0x20] ss:$8 sm:$0xf] }
 0x139   : > { %v5948_v1 = vsel %vm1443_vm11, %v1436_v26, %v1438_v0  ;;  %1391 = vmatpush1.msra.mxu1 %v1282_v62  ;;  %5430 = vmatmul.mubr.msk.f32.vlgmr.msra.gmra.mxu0 %vm380_vm6, %v5429_v60  ;;  %v5963_v11 = vsel %vm1443_vm11, %v1438_v0, %v1440_v47 }
 0x13a   : > { %v1472_v2 = vmul.f32 %v1458_v59, %v5948_v1  ;;  %5431 = vmatmul.mubr.msk.f32.vlgmr.msra.gmra.mxu1 %vm380_vm6, %v5429_v60  ;;  %1544 = vmatprep.mubr.f32.mxu0 %v6522_v28  ;;  %v1473_v35 = vmul.f32 %v1462_v9, %v5963_v11  ;;  %v5437_v9 = vld [vmem:[%s6518_s3 + $0x38] sm:$0xff] }
 0x13b   : > { %1615 = vmatprep.mubr.f32.mxu1 %v6522_v28 }
 0x13c   : > { %v1631_v13 = vpop.permute.xlu0 %1630  ;;  %1510 = vmatprep.subr.mxu0 %v1472_v2  ;;  %v1442_v14 = vpop.permute.xlu1 %1441 }
 0x13d   : > { %v5967_v18 = vsel %vm1443_vm11, %v1440_v47, %v1442_v14  ;;  %v5971_v19 = vsel %vm1443_vm11, %v1442_v14, %v1436_v26  ;;  %v1657_v47 = vrot.slane %v5436_v10, %v5718_v41 }
 0x13e   : > { %v1471_v20 = vmul.f32 %v1454_v5, %v5971_v19  ;;  %v1474_v21 = vmul.f32 %v1466_v6, %v5967_v18  ;;  %v1840_v6 = vrot.slane %v5440_v55, %v5709_v36 }
 0x140   : > { %v1818_v37 = vpop.permute.xlu0 %1817  ;;  %1511 = vmatpush1.msra.mxu0 %v1471_v20  ;;  %1581 = vmatprep.subr.mxu1 %v1474_v21  ;;  %v1629_v38 = vpop.permute.xlu1 %1628  ;;  %v1836_v21 = vrot.slane %v5440_v55, %v5716_v40 }
 0x141   : > { %v5983_v26 = vsel %vm1634_vm12, %v1627_v63, %v1629_v38  ;;  %1582 = vmatpush1.msra.mxu1 %v1473_v35  ;;  %5434 = vmatmul.mubr.msk.f32.vlgmr.msra.gmra.mxu0 %vm380_vm6, %v5433_v33  ;;  %v5998_v56 = vsel %vm1634_vm12, %v1629_v38, %v1631_v13  ;;  %v5444_v35 = vld [vmem:[%s6520_s5 + $0x21] ss:$8 sm:$0xf] }
 0x142   : > { %v1663_v39 = vmul.f32 %v1649_v23, %v5983_v26  ;;  %5435 = vmatmul.mubr.msk.f32.vlgmr.msra.gmra.mxu1 %vm380_vm6, %v5433_v33  ;;  %1735 = vmatprep.mubr.f32.mxu0 %v6522_v28  ;;  %v1664_v10 = vmul.f32 %v1653_v48, %v5998_v56  ;;  %v1848_v23 = vrot.slane %v5440_v55, %v5718_v41 }
 0x143   : > { %1806 = vmatprep.mubr.f32.mxu1 %v6522_v28  ;;  %v1844_v33 = vrot.slane %v5440_v55, %v5720_v42 }
 0x144   : > { %v1822_v59 = vpop.permute.xlu0 %1821  ;;  %1701 = vmatprep.subr.mxu0 %v1663_v39  ;;  %v1633_v60 = vpop.permute.xlu1 %1632 }
 0x145   : > { %v6002_v62 = vsel %vm1634_vm12, %v1631_v13, %v1633_v60  ;;  %v6006_v0 = vsel %vm1634_vm12, %v1633_v60, %v1627_v63 }
 0x146   : > { %6530 = vst [vmem:[#allocation2_spill] sm:$0xff] %v6002_v62  ;;  %6531 = vst [vmem:[#allocation3_spill] sm:$0xff] %v6006_v0  ;;  %v1662_v2 = vmul.f32 %v1645_v44, %v6006_v0  ;;  %v1665_v5 = vmul.f32 %v1657_v47, %v6002_v62  ;;  %v5457_v62 = vld [vmem:[%s6518_s3 + $0x60] sm:$0xff] }
 0x148   : > { %v2009_v13 = vpop.permute.xlu0 %2008  ;;  %1702 = vmatpush1.msra.mxu0 %v1662_v2  ;;  %1772 = vmatprep.subr.mxu1 %v1665_v5  ;;  %v1820_v14 = vpop.permute.xlu1 %1819  ;;  %v2031_v2 = vrot.slane %v5444_v35, %v5709_v36  ;;  %v5441_v5 = vld [vmem:[%s6518_s3 + $0x40] sm:$0xff] }
 0x149   : > { %v6018_v63 = vsel %vm1825_vm13, %v1818_v37, %v1820_v14  ;;  %1773 = vmatpush1.msra.mxu1 %v1664_v10  ;;  %5438 = vmatmul.mubr.msk.f32.vlgmr.msra.gmra.mxu0 %vm380_vm6, %v5437_v9  ;;  %v6033_v38 = vsel %vm1825_vm13, %v1820_v14, %v1822_v59  ;;  %v2027_v14 = vrot.slane %v5444_v35, %v5716_v40 }
 0x14a   : > { %6532 = vst [vmem:[#allocation4_spill] sm:$0xff] %v6018_v63  ;;  %v1854_v20 = vmul.f32 %v1840_v6, %v6018_v63  ;;  %5439 = vmatmul.mubr.msk.f32.vlgmr.msra.gmra.mxu1 %vm380_vm6, %v5437_v9  ;;  %1926 = vmatprep.mubr.f32.mxu0 %v6522_v28  ;;  %6533 = vst [vmem:[#allocation5_spill] sm:$0xff] %v6033_v38  ;;  %v1855_v6 = vmul.f32 %v1844_v33, %v6033_v38 }
 0x14b   : > { %1997 = vmatprep.mubr.f32.mxu1 %v6522_v28 }
 0x14c   : > { %v2013_v39 = vpop.permute.xlu0 %2012  ;;  %1892 = vmatprep.subr.mxu0 %v1854_v20  ;;  %v1824_v44 = vpop.permute.xlu1 %1823  ;;  %v2039_v20 = vrot.slane %v5444_v35, %v5718_v41 }
 0x14d   : > { %v6037_v47 = vsel %vm1825_vm13, %v1822_v59, %v1824_v44  ;;  %v6041_v48 = vsel %vm1825_vm13, %v1824_v44, %v1818_v37 }
 0x14e   : > { %6534 = vst [vmem:[#allocation6_spill] sm:$0xff] %v6037_v47  ;;  %6535 = vst [vmem:[#allocation7_spill] sm:$0xff] %v6041_v48  ;;  %v1853_v55 = vmul.f32 %v1836_v21, %v6041_v48  ;;  %v1856_v60 = vmul.f32 %v1848_v23, %v6037_v47  ;;  %v2035_v21 = vrot.slane %v5444_v35, %v5720_v42  ;;  %v5448_v23 = vld [vmem:[%s6520_s5 + $0x22] ss:$8 sm:$0xf] }
 0x150   : > { %v2200_v59 = vpop.permute.xlu0 %2199  ;;  %1893 = vmatpush1.msra.mxu0 %v1853_v55  ;;  %1963 = vmatprep.subr.mxu1 %v1856_v60  ;;  %v2011_v9 = vpop.permute.xlu1 %2010 }
 0x151   : > { %v2019_v37 = vsel %vm2016_vm14, %v2009_v13, %v2011_v9  ;;  %1964 = vmatpush1.msra.mxu1 %v1855_v6  ;;  %5442 = vmatmul.mubr.msk.f32.vlgmr.msra.gmra.mxu0 %vm380_vm6, %v5441_v5  ;;  %v2018_v33 = vsel %vm2016_vm14, %v2011_v9, %v2013_v39  ;;  %v2222_v6 = vrot.slane %v5448_v23, %v5709_v36 }
 0x152   : > { %v2045_v10 = vmul.f32 %v2031_v2, %v2019_v37  ;;  %5443 = vmatmul.mubr.msk.f32.vlgmr.msra.gmra.mxu1 %vm380_vm6, %v5441_v5  ;;  %2117 = vmatprep.mubr.f32.mxu0 %v6522_v28  ;;  %v5445_v37 = vld [vmem:[%s6518_s3 + $0x48] sm:$0xff]  ;;  %v2046_v9 = vmul.f32 %v2035_v21, %v2018_v33  ;;  %v2226_v21 = vrot.slane %v5448_v23, %v5720_v42 }
 0x153   : > { %2188 = vmatprep.mubr.f32.mxu1 %v6522_v28  ;;  %v5452_v33 = vld [vmem:[%s6520_s5 + $0x23] ss:$8 sm:$0xf] }
 0x154   : > { %v2204_v44 = vpop.permute.xlu0 %2203  ;;  %2083 = vmatprep.subr.mxu0 %v2045_v10  ;;  %v2015_v55 = vpop.permute.xlu1 %2014 }
 0x155   : > { %v2017_v60 = vsel %vm2016_vm14, %v2013_v39, %v2015_v55  ;;  %v2020_v2 = vsel %vm2016_vm14, %v2015_v55, %v2009_v13  ;;  %v6536_v55 = vmov 0.0  }
 0x156   : > { %v2044_v5 = vmul.f32 %v2027_v14, %v2020_v2  ;;  %v2047_v35 = vmul.f32 %v2039_v20, %v2017_v60  ;;  %v2218_v14 = vrot.slane %v5448_v23, %v5716_v40  ;;  %v2230_v20 = vrot.slane %v5448_v23, %v5718_v41 }
 0x158   : > { %v2391_v28 = vpop.permute.xlu0 %2390  ;;  %2084 = vmatpush1.msra.mxu0 %v2044_v5  ;;  %2154 = vmatprep.subr.mxu1 %v2047_v35  ;;  %v2202_v10 = vpop.permute.xlu1 %2201 }
 0x159   : > { %v2210_v39 = vsel %vm2207_vm15, %v2200_v59, %v2202_v10  ;;  %2155 = vmatpush1.msra.mxu1 %v2046_v9  ;;  %5446 = vmatmul.mubr.msk.f32.vlgmr.msra.gmra.mxu0 %vm380_vm6, %v5445_v37  ;;  %v2209_v60 = vsel %vm2207_vm15, %v2202_v10, %v2204_v44  ;;  %v2413_v9 = vrot.slane %v5452_v33, %v5709_v36 }
 0x15a   : > { %v2236_v13 = vmul.f32 %v2222_v6, %v2210_v39  ;;  %5447 = vmatmul.mubr.msk.f32.vlgmr.msra.gmra.mxu1 %vm380_vm6, %v5445_v37  ;;  %2308 = vmatprep.mubr.f32.mxu0 %v6536_v55  ;;  %v5449_v39 = vld [vmem:[%s6518_s3 + $0x50] sm:$0xff]  ;;  %v2237_v10 = vmul.f32 %v2226_v21, %v2209_v60  ;;  %v2417_v21 = vrot.slane %v5452_v33, %v5720_v42 }
 0x15b   : > { %2379 = vmatprep.mubr.f32.mxu1 %v6536_v55  ;;  %v5456_v60 = vld [vmem:[%s6520_s5 + $0x24] ss:$8 sm:$0xf] }
 0x15c   : > { %v2395_v2 = vpop.permute.xlu0 %2394  ;;  %2274 = vmatprep.subr.mxu0 %v2236_v13  ;;  %v2206_v5 = vpop.permute.xlu1 %2205 }
 0x15d   : > { %v2208_v35 = vsel %vm2207_vm15, %v2204_v44, %v2206_v5  ;;  %v2211_v6 = vsel %vm2207_vm15, %v2206_v5, %v2200_v59 }
 0x15e   : > { %v2235_v37 = vmul.f32 %v2218_v14, %v2211_v6  ;;  %v2238_v23 = vmul.f32 %v2230_v20, %v2208_v35  ;;  %v2409_v14 = vrot.slane %v5452_v33, %v5716_v40  ;;  %v2421_v20 = vrot.slane %v5452_v33, %v5718_v41 }
 0x160   : > { %v2582_v47 = vpop.permute.xlu0 %2581  ;;  %2275 = vmatpush1.msra.mxu0 %v2235_v37  ;;  %2345 = vmatprep.subr.mxu1 %v2238_v23  ;;  %v2393_v13 = vpop.permute.xlu1 %2392 }
 0x161   : > { %v2401_v44 = vsel %vm2398_vm0, %v2391_v28, %v2393_v13  ;;  %5450 = vmatmul.mubr.msk.f32.vlgmr.msra.gmra.mxu0 %vm380_vm6, %v5449_v39  ;;  %2346 = vmatpush1.msra.mxu1 %v2237_v10  ;;  %v2400_v5 = vsel %vm2398_vm0, %v2393_v13, %v2395_v2  ;;  %v5453_v10 = vld [vmem:[%s6518_s3 + $0x58] sm:$0xff] }
 0x162   : > { %v2427_v59 = vmul.f32 %v2413_v9, %v2401_v44  ;;  %5451 = vmatmul.mubr.msk.f32.vlgmr.msra.gmra.mxu1 %vm380_vm6, %v5449_v39  ;;  %2499 = vmatprep.mubr.f32.mxu0 %v6536_v55  ;;  %v2604_v39 = vrot.slane %v5456_v60, %v5709_v36  ;;  %v2428_v13 = vmul.f32 %v2417_v21, %v2400_v5 }
 0x163   : > { %2570 = vmatprep.mubr.f32.mxu1 %v6536_v55  ;;  %v2612_v21 = vrot.slane %v5456_v60, %v5718_v41  ;;  %v2608_v5 = vrot.slane %v5456_v60, %v5720_v42 }
 0x164   : > { %v2586_v35 = vpop.permute.xlu0 %2585  ;;  %2465 = vmatprep.subr.mxu0 %v2427_v59  ;;  %v2397_v6 = vpop.permute.xlu1 %2396 }
 0x165   : > { %v2399_v37 = vsel %vm2398_vm0, %v2395_v2, %v2397_v6  ;;  %v2402_v23 = vsel %vm2398_vm0, %v2397_v6, %v2391_v28  ;;  %v5460_v2 = vld [vmem:[%s6520_s5 + $0x25] ss:$8 sm:$0xf]  ;;  %v5464_v6 = vld [vmem:[%s6520_s5 + $0x26] ss:$8 sm:$0xf] }
 0x166   : > { %v2426_v9 = vmul.f32 %v2409_v14, %v2402_v23  ;;  %v2429_v33 = vmul.f32 %v2421_v20, %v2399_v37  ;;  %v2600_v20 = vrot.slane %v5456_v60, %v5716_v40  ;;  %v2782_v37 = vrot.slane %v5460_v2, %v5709_v36 }
 0x167   : > { %v2786_v60 = vrot.slane %v5460_v2, %v5720_v42 }
 0x168   : > { %v2951_v44 = vpop.permute.xlu0 %2950  ;;  %2466 = vmatpush1.msra.mxu0 %v2426_v9  ;;  %2536 = vmatprep.subr.mxu1 %v2429_v33  ;;  %v2584_v59 = vpop.permute.xlu1 %2583 }
 0x169   : > { %v2592_v28 = vsel %vm2589_vm1, %v2582_v47, %v2584_v59  ;;  %5454 = vmatmul.mubr.msk.f32.vlgmr.msra.gmra.mxu0 %vm380_vm6, %v5453_v10  ;;  %2537 = vmatpush1.msra.mxu1 %v2428_v13  ;;  %v2591_v23 = vsel %vm2589_vm1, %v2584_v59, %v2586_v35  ;;  %v2969_v59 = vrot.slane %v5464_v6, %v5716_v40 }
 0x16a   : > { %v2618_v14 = vmul.f32 %v2604_v39, %v2592_v28  ;;  %5455 = vmatmul.mubr.msk.f32.vlgmr.msra.gmra.mxu1 %vm380_vm6, %v5453_v10  ;;  %2690 = vmatprep.mubr.f32.mxu0 %v6536_v55  ;;  %v2778_v39 = vrot.slane %v5460_v2, %v5716_v40  ;;  %v2790_v10 = vrot.slane %v5460_v2, %v5718_v41 }
 0x16b   : > { %2761 = vmatprep.mubr.f32.mxu1 %v6536_v55  ;;  %v2619_v38 = vmul.f32 %v2608_v5, %v2591_v23  ;;  %v2796_v2 = vmul.f32 %v2782_v37, %v5642_v27  ;;  %v2977_v27 = vrot.slane %v5464_v6, %v5720_v42 }
 0x16c   : > { %v2955_v9 = vpop.permute.xlu0 %2954  ;;  %2656 = vmatprep.subr.mxu0 %v2618_v14  ;;  %v2588_v33 = vpop.permute.xlu1 %2587  ;;  %v2973_v14 = vrot.slane %v5464_v6, %v5709_v36 }
 0x16d   : > { %v2590_v13 = vsel %vm2589_vm1, %v2586_v35, %v2588_v33  ;;  %v2593_v28 = vsel %vm2589_vm1, %v2588_v33, %v2582_v47  ;;  %v2795_v47 = vmul.f32 %v2778_v39, %v5636_v24  ;;  %v2981_v24 = vrot.slane %v5464_v6, %v5718_v41 }
 0x16e   : > { %v2617_v48 = vmul.f32 %v2600_v20, %v2593_v28  ;;  %v2620_v63 = vmul.f32 %v2612_v21, %v2590_v13  ;;  %v2798_v20 = vmul.f32 %v2790_v10, %v5648_v29  ;;  %v2797_v21 = vmul.f32 %v2786_v60, %v5638_v25  ;;  %v5461_v25 = vld [vmem:[%s6518_s3 + $0x68] sm:$0xff] }
 0x16f   : > { %v5468_v29 = vld [vmem:[%s6520_s5 + $0x27] ss:$8 sm:$0xf] }
 0x170   : > { %v3142_v0 = vpop.permute.xlu0 %3141  ;;  %2657 = vmatpush1.msra.mxu0 %v2617_v48  ;;  %2727 = vmatprep.subr.mxu1 %v2620_v63  ;;  %v2953_v35 = vpop.permute.xlu1 %2952  ;;  %v3160_v37 = vrot.slane %v5468_v29, %v5716_v40  ;;  %v3164_v10 = vrot.slane %v5468_v29, %v5709_v36 }
 0x171   : > { %v2960_v33 = vsel %vm2958_vm2, %v2953_v35, %v2955_v9  ;;  %v2961_v13 = vsel %vm2958_vm2, %v2951_v44, %v2953_v35  ;;  %5458 = vmatmul.mubr.msk.f32.vlgmr.msra.gmra.mxu0 %vm380_vm6, %v5457_v62  ;;  %2728 = vmatpush1.msra.mxu1 %v2619_v38  ;;  %v3168_v35 = vrot.slane %v5468_v29, %v5720_v42 }
 0x172   : > { %v2986_v48 = vmul.f32 %v2969_v59, %v2961_v13  ;;  %v2987_v63 = vmul.f32 %v2973_v14, %v2960_v33  ;;  %2834 = vmatprep.subr.mxu0 %v2796_v2  ;;  %5459 = vmatmul.mubr.msk.f32.vlgmr.msra.gmra.mxu1 %vm380_vm6, %v5457_v62 }
 0x173   : > { %2835 = vmatpush1.msra.mxu0 %v2795_v47  ;;  %2905 = vmatprep.subr.mxu1 %v2798_v20  ;;  %v3172_v47 = vrot.slane %v5468_v29, %v5718_v41  ;;  %v5469_v20 = vld [vmem:[%s6518_s3 + $0x78] sm:$0xff] }
 0x174   : > { %2906 = vmatpush1.msra.mxu1 %v2797_v21  ;;  %v3146_v38 = vpop.permute.xlu0 %3145  ;;  %2868 = vmatprep.mubr.f32.mxu0 %v6536_v55  ;;  %v2957_v5 = vpop.permute.xlu1 %2956  ;;  %v5472_v21 = vld [vmem:[%s6520_s5 + $0x40] ss:$8 sm:$0xf] }
 0x175   : > { %v2959_v62 = vsel %vm2958_vm2, %v2955_v9, %v2957_v5  ;;  %v2962_v6 = vsel %vm2958_vm2, %v2957_v5, %v2951_v44  ;;  %3025 = vmatprep.subr.mxu0 %v2987_v63  ;;  %5462 = vmatmul.mubr.msk.f32.vlgmr.msra.gmra.mxu0 %vm380_vm6, %v5461_v25  ;;  %v5465_v9 = vld [vmem:[%s6518_s3 + $0x70] sm:$0xff]  ;;  %v3355_v29 = vrot.slane %v5472_v21, %v5709_v36 }
 0x176   : > { %v2988_v23 = vmul.f32 %v2977_v27, %v2959_v62  ;;  %v2989_v39 = vmul.f32 %v2981_v24, %v2962_v6  ;;  %2939 = vmatprep.mubr.f32.mxu1 %v6536_v55  ;;  %3026 = vmatpush1.msra.mxu0 %v2986_v48 }
 0x177   : > { %5463 = vmatmul.mubr.msk.f32.vlgmr.msra.gmra.mxu1 %vm380_vm6, %v5461_v25  ;;  %3059 = vmatprep.mubr.f32.mxu0 %v6536_v55  ;;  %v3351_v25 = vrot.slane %v5472_v21, %v5716_v40 }
 0x178   : > { %v3333_v44 = vpop.permute.xlu0 %3332  ;;  %3096 = vmatprep.subr.mxu1 %v2989_v39  ;;  %v3144_v60 = vpop.permute.xlu1 %3143  ;;  %3130 = vmatprep.mubr.f32.mxu1 %v6536_v55  ;;  %v3363_v39 = vrot.slane %v5472_v21, %v5718_v41 }
 0x179   : > { %v3151_v28 = vsel %vm3149_vm3, %v3144_v60, %v3146_v38  ;;  %v3152_v59 = vsel %vm3149_vm3, %v3142_v0, %v3144_v60  ;;  %5466 = vmatmul.mubr.msk.f32.vlgmr.msra.gmra.mxu0 %vm380_vm6, %v5465_v9  ;;  %3097 = vmatpush1.msra.mxu1 %v2988_v23  ;;  %v3359_v23 = vrot.slane %v5472_v21, %v5720_v42 }
 0x17a   : > { %v3177_v14 = vmul.f32 %v3160_v37, %v3152_v59  ;;  %v3178_v2 = vmul.f32 %v3164_v10, %v3151_v28  ;;  %3250 = vmatprep.mubr.f32.mxu0 %v6536_v55  ;;  %v5473_v10 = vld [vmem:[%s6518_s3 + $0x80] sm:$0xff] }
 0x17b   : > { %5467 = vmatmul.mubr.msk.f32.vlgmr.msra.gmra.mxu1 %vm380_vm6, %v5465_v9  ;;  %v5476_v9 = vld [vmem:[%s6520_s5 + $0x41] ss:$8 sm:$0xf]  ;;  %v5480_v28 = vld [vmem:[%s6520_s5 + $0x42] ss:$8 sm:$0xf] }
 0x17c   : > { %v3148_v33 = vpop.permute.xlu1 %3147  ;;  %3216 = vmatprep.subr.mxu0 %v3178_v2  ;;  %3321 = vmatprep.mubr.f32.mxu1 %v6536_v55  ;;  %v3337_v13 = vpop.permute.xlu0 %3336  ;;  %v6236_v2 = vld [vmem:[%s6520_s5 + $0x43] ss:$8 sm:$0xf]  ;;  %v3546_v21 = vrot.slane %v5476_v9, %v5709_v36 }
 0x17d   : > { %v3150_v27 = vsel %vm3149_vm3, %v3146_v38, %v3148_v33  ;;  %v3153_v48 = vsel %vm3149_vm3, %v3148_v33, %v3142_v0  ;;  %3217 = vmatpush1.msra.mxu0 %v3177_v14  ;;  %v3724_v33 = vrot.slane %v5480_v28, %v5709_v36 }
 0x17e   : > { %v3179_v63 = vmul.f32 %v3168_v35, %v3150_v27  ;;  %v3180_v24 = vmul.f32 %v3172_v47, %v3153_v48  ;;  %5470 = vmatmul.mubr.msk.f32.vlgmr.msra.gmra.mxu0 %vm380_vm6, %v5469_v20  ;;  %v3902_v27 = vrot.slane %v6236_v2, %v5709_v36  ;;  %v3720_v48 = vrot.slane %v5480_v28, %v5716_v40 }
 0x17f   : > { %3441 = vmatprep.mubr.f32.mxu0 %v6536_v55 }
 0x180   : > { %3287 = vmatprep.subr.mxu1 %v3180_v24  ;;  %v3335_v5 = vpop.permute.xlu1 %3334  ;;  %v3524_v37 = vpop.permute.xlu0 %3523 }
 0x181   : > { %v3342_v38 = vsel %vm3340_vm4, %v3335_v5, %v3337_v13  ;;  %v3343_v0 = vsel %vm3340_vm4, %v3333_v44, %v3335_v5  ;;  %3288 = vmatpush1.msra.mxu1 %v3179_v63 }
 0x182   : > { %v3368_v62 = vmul.f32 %v3351_v25, %v3343_v0  ;;  %v3369_v6 = vmul.f32 %v3355_v29, %v3342_v38  ;;  %5471 = vmatmul.mubr.msk.f32.vlgmr.msra.gmra.mxu1 %vm380_vm6, %v5469_v20  ;;  %v3542_v20 = vrot.slane %v5476_v9, %v5716_v40  ;;  %v6252_v25 = vld [vmem:[%s6520_s5 + $0x44] ss:$8 sm:$0xf]  ;;  %v3550_v38 = vrot.slane %v5476_v9, %v5720_v42 }
 0x183   : > { %3512 = vmatprep.mubr.f32.mxu1 %v6536_v55  ;;  %v3554_v0 = vrot.slane %v5476_v9, %v5718_v41  ;;  %v4080_v9 = vrot.slane %v6252_v25, %v5709_v36 }
 0x184   : > { %3407 = vmatprep.subr.mxu0 %v3369_v6  ;;  %v3339_v60 = vpop.permute.xlu1 %3338  ;;  %v3898_v6 = vrot.slane %v6236_v2, %v5716_v40 }
 0x185   : > { %3408 = vmatpush1.msra.mxu0 %v3368_v62  ;;  %v3341_v59 = vsel %vm3340_vm4, %v3337_v13, %v3339_v60  ;;  %v3344_v14 = vsel %vm3340_vm4, %v3339_v60, %v3333_v44  ;;  %v3528_v44 = vpop.permute.xlu0 %3527  ;;  %v5477_v62 = vld [vmem:[%s6518_s3 + $0x88] sm:$0xff]  ;;  %v3732_v60 = vrot.slane %v5480_v28, %v5718_v41 }
 0x186   : > { %5474 = vmatmul.mubr.msk.f32.vlgmr.msra.gmra.mxu0 %vm380_vm6, %v5473_v10  ;;  %v3370_v35 = vmul.f32 %v3359_v23, %v3341_v59  ;;  %v3371_v47 = vmul.f32 %v3363_v39, %v3344_v14  ;;  %v3738_v23 = vmul.f32 %v3724_v33, %v5782_v4  ;;  %v3728_v39 = vrot.slane %v5480_v28, %v5720_v42  ;;  %v5481_v28 = vld [vmem:[%s6518_s3 + $0x90] sm:$0xff] }
 0x187   : > { %3632 = vmatprep.mubr.f32.mxu0 %v6536_v55  ;;  %v3737_v59 = vmul.f32 %v3720_v48, %v5762_v61  ;;  %v3916_v4 = vmul.f32 %v3902_v27, %v5738_v49  ;;  %v3910_v61 = vrot.slane %v6236_v2, %v5718_v41  ;;  %v3915_v49 = vmul.f32 %v3898_v6, %v5724_v43 }
 0x188   : > { %3478 = vmatprep.subr.mxu1 %v3371_v47  ;;  %v3526_v13 = vpop.permute.xlu1 %3525  ;;  %v4076_v33 = vrot.slane %v6252_v25, %v5716_v40  ;;  %v4088_v27 = vrot.slane %v6252_v25, %v5718_v41  ;;  %v4084_v48 = vrot.slane %v6252_v25, %v5720_v42  ;;  %v5500_v25 = vld [vmem:[%s6520_s5 + $0x47] ss:$8 sm:$0xf] }
 0x189   : > { %v3533_v63 = vsel %vm3531_vm5, %v3526_v13, %v3528_v44  ;;  %v3534_v24 = vsel %vm3531_vm5, %v3524_v37, %v3526_v13  ;;  %3479 = vmatpush1.msra.mxu1 %v3370_v35  ;;  %v4094_v13 = vmul.f32 %v4080_v9, %v5822_v22  ;;  %v3918_v43 = vmul.f32 %v3910_v61, %v5742_v52 }
 0x18a   : > { %v3559_v29 = vmul.f32 %v3542_v20, %v3534_v24  ;;  %v3560_v5 = vmul.f32 %v3546_v21, %v3533_v63  ;;  %5475 = vmatmul.mubr.msk.f32.vlgmr.msra.gmra.mxu1 %vm380_vm6, %v5473_v10  ;;  %v3740_v21 = vmul.f32 %v3732_v60, %v5791_v8  ;;  %v5496_v8 = vld [vmem:[%s6520_s5 + $0x46] ss:$8 sm:$0xf]  ;;  %v4254_v52 = vrot.slane %v5492_v32, %v5716_v40 }
 0x18b   : > { %3703 = vmatprep.mubr.f32.mxu1 %v6536_v55  ;;  %v4093_v63 = vmul.f32 %v4076_v33, %v5806_v16  ;;  %v4096_v24 = vmul.f32 %v4088_v27, %v5831_v31  ;;  %v5489_v16 = vld [vmem:[%s6518_s3 + $0xa0] sm:$0xff]  ;;  %v4095_v31 = vmul.f32 %v4084_v48, %v5827_v30  ;;  %v4444_v6 = vrot.slane %v5496_v8, %v5718_v41 }
 0x18c   : > { %v3530_v10 = vpop.permute.xlu1 %3529  ;;  %3598 = vmatprep.subr.mxu0 %v3560_v5  ;;  %v4436_v5 = vrot.slane %v5496_v8, %v5709_v36  ;;  %v4614_v30 = vrot.slane %v5500_v25, %v5709_v36  ;;  %v4440_v60 = vrot.slane %v5496_v8, %v5720_v42  ;;  %v4622_v9 = vrot.slane %v5500_v25, %v5718_v41 }
 0x18d   : > { %v3532_v14 = vsel %vm3531_vm5, %v3528_v44, %v3530_v10  ;;  %v3535_v35 = vsel %vm3531_vm5, %v3530_v10, %v3524_v37  ;;  %3599 = vmatpush1.msra.mxu0 %v3559_v29  ;;  %v3906_v37 = vrot.slane %v6236_v2, %v5720_v42  ;;  %v3739_v44 = vmul.f32 %v3728_v39, %v5787_v7  ;;  %v5485_v7 = vld [vmem:[%s6518_s3 + $0x98] sm:$0xff] }
 0x18e   : > { %v3561_v47 = vmul.f32 %v3550_v38, %v3532_v14  ;;  %v3562_v20 = vmul.f32 %v3554_v0, %v3535_v35  ;;  %5478 = vmatmul.mubr.msk.f32.vlgmr.msra.gmra.mxu0 %vm380_vm6, %v5477_v62  ;;  %3776 = vmatprep.subr.mxu0 %v3738_v23  ;;  %v4258_v2 = vrot.slane %v5492_v32, %v5709_v36  ;;  %v5504_v39 = vld [vmem:[%s6520_s5 + $0x60] ss:$8 sm:$0xf]  ;;  %v5508_v35 = vld [vmem:[%s6520_s5 + $0x61] ss:$8 sm:$0xf] }
 0x18f   : > { %3777 = vmatpush1.msra.mxu0 %v3737_v59  ;;  %3810 = vmatprep.mubr.f32.mxu0 %v6536_v55  ;;  %v3917_v22 = vmul.f32 %v3906_v37, %v5746_v53  ;;  %v4266_v29 = vrot.slane %v5492_v32, %v5718_v41  ;;  %v4262_v38 = vrot.slane %v5492_v32, %v5720_v42  ;;  %v5512_v32 = vld [vmem:[%s6520_s5 + $0x62] ss:$8 sm:$0xf] }
 0x190   : > { %3669 = vmatprep.subr.mxu1 %v3562_v20  ;;  %3954 = vmatprep.subr.mxu0 %v3916_v4  ;;  %v4272_v53 = vmul.f32 %v4258_v2, %v5858_v54  ;;  %v4432_v54 = vrot.slane %v5496_v8, %v5716_v40  ;;  %v4271_v0 = vmul.f32 %v4254_v52, %v5843_v45  ;;  %v5493_v45 = vld [vmem:[%s6518_s3 + $0xa8] sm:$0xff]  ;;  %v6538_v8 = vld [vmem:[#allocation5_spill] sm:$0xff] }
 0x191   : > { %3670 = vmatpush1.msra.mxu1 %v3561_v47  ;;  %v4450_v23 = vmul.f32 %v4436_v5, %v5893_v12  ;;  %v4610_v12 = vrot.slane %v5500_v25, %v5716_v40  ;;  %v4452_v59 = vmul.f32 %v4444_v6, %v5901_v17  ;;  %v4628_v14 = vmul.f32 %v4614_v30, %v5928_v46  ;;  %v6541_v52 = vld [vmem:[#allocation7_spill] sm:$0xff] }
 0x192   : > { %5479 = vmatmul.mubr.msk.f32.vlgmr.msra.gmra.mxu1 %vm380_vm6, %v5477_v62  ;;  %5482 = vmatmul.mubr.msk.f32.vlgmr.msra.gmra.mxu0 %vm380_vm6, %v5481_v28  ;;  %v4274_v62 = vmul.f32 %v4266_v29, %v5866_v58  ;;  %v4273_v58 = vmul.f32 %v4262_v38, %v5862_v57  ;;  %v4449_v10 = vmul.f32 %v4432_v54, %v5878_v3  ;;  %v5497_v3 = vld [vmem:[%s6518_s3 + $0xb0] sm:$0xff] }
 0x193   : > { %3847 = vmatprep.subr.mxu1 %v3740_v21  ;;  %3955 = vmatpush1.msra.mxu0 %v3915_v49  ;;  %v4792_v57 = vrot.slane %v5504_v39, %v5709_v36  ;;  %v4451_v17 = vmul.f32 %v4440_v60, %v5897_v15  ;;  %v4618_v4 = vrot.slane %v5500_v25, %v5720_v42 }
 0x194   : > { %3848 = vmatpush1.msra.mxu1 %v3739_v44  ;;  %4132 = vmatprep.subr.mxu0 %v4094_v13  ;;  %v4788_v46 = vrot.slane %v5504_v39, %v5716_v40  ;;  %v4627_v47 = vmul.f32 %v4610_v12, %v5913_v34  ;;  %v4630_v20 = vmul.f32 %v4622_v9, %v5936_v51  ;;  %v5501_v34 = vld [vmem:[%s6518_s3 + $0xb8] sm:$0xff] }
 0x195   : > { %4025 = vmatprep.subr.mxu1 %v3918_v43  ;;  %3881 = vmatprep.mubr.f32.mxu1 %v6536_v55  ;;  %v4800_v61 = vrot.slane %v5504_v39, %v5718_v41  ;;  %v4970_v15 = vrot.slane %v5508_v35, %v5709_v36  ;;  %v4629_v51 = vmul.f32 %v4618_v4, %v5932_v50 }
 0x196   : > { %3988 = vmatprep.mubr.f32.mxu0 %v6536_v55  ;;  %5483 = vmatmul.mubr.msk.f32.vlgmr.msra.gmra.mxu1 %vm380_vm6, %v5481_v28  ;;  %v4806_v28 = vmul.f32 %v4792_v57, %v5963_v11  ;;  %v4796_v49 = vrot.slane %v5504_v39, %v5720_v42  ;;  %v4966_v11 = vrot.slane %v5508_v35, %v5716_v40 }
 0x197   : > { %5486 = vmatmul.mubr.msk.f32.vlgmr.msra.gmra.mxu0 %vm380_vm6, %v5485_v7  ;;  %4026 = vmatpush1.msra.mxu1 %v3917_v22  ;;  %v4805_v37 = vmul.f32 %v4788_v46, %v5948_v1  ;;  %v4808_v21 = vmul.f32 %v4800_v61, %v5971_v19  ;;  %v4978_v33 = vrot.slane %v5508_v35, %v5718_v41  ;;  %v5505_v1 = vld [vmem:[%s6518_s3 + $0xc0] sm:$0xff] }
 0x198   : > { %4133 = vmatpush1.msra.mxu0 %v4093_v63  ;;  %4203 = vmatprep.subr.mxu1 %v4096_v24  ;;  %v4984_v44 = vmul.f32 %v4970_v15, %v5998_v56  ;;  %v5148_v50 = vrot.slane %v5512_v32, %v5709_v36  ;;  %v4807_v19 = vmul.f32 %v4796_v49, %v5967_v18  ;;  %v6537_v56 = vld [vmem:[#allocation3_spill] sm:$0xff]  ;;  %v6539_v18 = vld [vmem:[#allocation2_spill] sm:$0xff] }
 0x199   : > { %4310 = vmatprep.subr.mxu0 %v4272_v53  ;;  %4059 = vmatprep.mubr.f32.mxu1 %v6536_v55  ;;  %v4974_v13 = vrot.slane %v5508_v35, %v5720_v42  ;;  %v5144_v27 = vrot.slane %v5512_v32, %v5716_v40  ;;  %v4983_v36 = vmul.f32 %v4966_v11, %v5983_v26  ;;  %v5509_v40 = vld [vmem:[%s6518_s3 + $0xc8] sm:$0xff]  ;;  %v6542_v24 = vld [vmem:[#allocation6_spill] sm:$0xff] }
 0x19a   : > { %4166 = vmatprep.mubr.f32.mxu0 %v6536_v55  ;;  %5487 = vmatmul.mubr.msk.f32.vlgmr.msra.gmra.mxu1 %vm380_vm6, %v5485_v7  ;;  %v4986_v43 = vmul.f32 %v4978_v33, %v6537_v56  ;;  %v5156_v2 = vrot.slane %v5512_v32, %v5718_v41  ;;  %v5162_v7 = vmul.f32 %v5148_v50, %v6538_v8  ;;  %v6540_v41 = vld [vmem:[#allocation4_spill] sm:$0xff] }
 0x19b   : > { %5490 = vmatmul.mubr.msk.f32.vlgmr.msra.gmra.mxu0 %vm380_vm6, %v5489_v16  ;;  %4204 = vmatpush1.msra.mxu1 %v4095_v31  ;;  %v4985_v26 = vmul.f32 %v4974_v13, %v6539_v18  ;;  %v5152_v22 = vrot.slane %v5512_v32, %v5720_v42  ;;  %v5161_v48 = vmul.f32 %v5144_v27, %v6540_v41  ;;  %v5513_v42 = vld [vmem:[%s6518_s3 + $0xd0] sm:$0xff] }
 0x19c   : > { %4311 = vmatpush1.msra.mxu0 %v4271_v0  ;;  %4381 = vmatprep.subr.mxu1 %v4274_v62  ;;  %v5164_v63 = vmul.f32 %v5156_v2, %v6541_v52 }
 0x19d   : > { %4488 = vmatprep.subr.mxu0 %v4450_v23  ;;  %4237 = vmatprep.mubr.f32.mxu1 %v6536_v55  ;;  %v5163_v29 = vmul.f32 %v5152_v22, %v6542_v24 }
 0x19e   : > { %4344 = vmatprep.mubr.f32.mxu0 %v6536_v55  ;;  %5491 = vmatmul.mubr.msk.f32.vlgmr.msra.gmra.mxu1 %vm380_vm6, %v5489_v16 }
 0x19f   : > { %5494 = vmatmul.mubr.msk.f32.vlgmr.msra.gmra.mxu0 %vm380_vm6, %v5493_v45  ;;  %4382 = vmatpush1.msra.mxu1 %v4273_v58 }
 0x1a0   : > { %4489 = vmatpush1.msra.mxu0 %v4449_v10  ;;  %4559 = vmatprep.subr.mxu1 %v4452_v59 }
 0x1a1   : > { %4666 = vmatprep.subr.mxu0 %v4628_v14  ;;  %4415 = vmatprep.mubr.f32.mxu1 %v6536_v55 }
 0x1a2   : > { %4522 = vmatprep.mubr.f32.mxu0 %v6536_v55  ;;  %5495 = vmatmul.mubr.msk.f32.vlgmr.msra.gmra.mxu1 %vm380_vm6, %v5493_v45 }
 0x1a3   : > { %5498 = vmatmul.mubr.msk.f32.vlgmr.msra.gmra.mxu0 %vm380_vm6, %v5497_v3  ;;  %4560 = vmatpush1.msra.mxu1 %v4451_v17 }
 0x1a4   : > { %4667 = vmatpush1.msra.mxu0 %v4627_v47  ;;  %4737 = vmatprep.subr.mxu1 %v4630_v20 }
 0x1a5   : > { %4844 = vmatprep.subr.mxu0 %v4806_v28  ;;  %4593 = vmatprep.mubr.f32.mxu1 %v6536_v55 }
 0x1a6   : > { %4700 = vmatprep.mubr.f32.mxu0 %v6536_v55  ;;  %5499 = vmatmul.mubr.msk.f32.vlgmr.msra.gmra.mxu1 %vm380_vm6, %v5497_v3 }
 0x1a7   : > { %5502 = vmatmul.mubr.msk.f32.vlgmr.msra.gmra.mxu0 %vm380_vm6, %v5501_v34  ;;  %4738 = vmatpush1.msra.mxu1 %v4629_v51 }
 0x1a8   : > { %4845 = vmatpush1.msra.mxu0 %v4805_v37  ;;  %4915 = vmatprep.subr.mxu1 %v4808_v21 }
 0x1a9   : > { %5022 = vmatprep.subr.mxu0 %v4984_v44  ;;  %4771 = vmatprep.mubr.f32.mxu1 %v6536_v55 }
 0x1aa   : > { %4878 = vmatprep.mubr.f32.mxu0 %v6536_v55  ;;  %5503 = vmatmul.mubr.msk.f32.vlgmr.msra.gmra.mxu1 %vm380_vm6, %v5501_v34 }
 0x1ab   : > { %5506 = vmatmul.mubr.msk.f32.vlgmr.msra.gmra.mxu0 %vm380_vm6, %v5505_v1  ;;  %4916 = vmatpush1.msra.mxu1 %v4807_v19 }
 0x1ac   : > { %5023 = vmatpush1.msra.mxu0 %v4983_v36  ;;  %5093 = vmatprep.subr.mxu1 %v4986_v43 }
 0x1ad   : > { %5200 = vmatprep.subr.mxu0 %v5162_v7  ;;  %4949 = vmatprep.mubr.f32.mxu1 %v6536_v55 }
 0x1ae   : > { %5056 = vmatprep.mubr.f32.mxu0 %v6536_v55  ;;  %5507 = vmatmul.mubr.msk.f32.vlgmr.msra.gmra.mxu1 %vm380_vm6, %v5505_v1 }
 0x1af   : > { %5510 = vmatmul.mubr.msk.f32.vlgmr.msra.gmra.mxu0 %vm380_vm6, %v5509_v40  ;;  %5094 = vmatpush1.msra.mxu1 %v4985_v26 }
 0x1b0   : > { %5201 = vmatpush1.msra.mxu0 %v5161_v48  ;;  %5271 = vmatprep.subr.mxu1 %v5164_v63 }
 0x1b1   : > { %5127 = vmatprep.mubr.f32.mxu1 %v6536_v55  ;;  %5234 = vmatprep.mubr.f32.mxu0 %v6536_v55 }
 0x1b2   : > { %5511 = vmatmul.mubr.msk.f32.vlgmr.msra.gmra.mxu1 %vm380_vm6, %v5509_v40 }
 0x1b3   : > { %5514 = vmatmul.mubr.msk.f32.vlgmr.msra.gmra.mxu0 %vm380_vm6, %v5513_v42  ;;  %5272 = vmatpush1.msra.mxu1 %v5163_v29 }
 0x1b4   : > { %5305 = vmatprep.mubr.f32.mxu1 %v6536_v55 }
 0x1b6   : > { %5515 = vmatmul.mubr.msk.f32.vlgmr.msra.gmra.mxu1 %vm380_vm6, %v5513_v42 }
 0x1d1   : > { %v450_v53 = vpop.f32.mrf.mxu0 }
 0x1d3   : > { %v521_v5 = vpop.f32.mrf.mxu1  ;;  %v452_v25 = vpop.f32.mrf.mxu0 }
 0x1d5   : > { %v523_v16 = vpop.f32.mrf.mxu1 }
 0x1d9   : > { %v595_v31 = vpop.f32.mrf.mxu0 }
 0x1da   : > { %v666_v38 = vpop.f32.mrf.mxu1  ;;  %v596_v56 = vadd.f32 %v595_v31, %v450_v53 }
 0x1db   : > { %v597_v54 = vpop.f32.mrf.mxu0  ;;  %v667_v22 = vadd.f32 %v666_v38, %v521_v5 }
 0x1dc   : > { %v668_v0 = vpop.f32.mrf.mxu1  ;;  %v598_v7 = vadd.f32 %v597_v54, %v452_v25 }
 0x1dd   : > { %v669_v48 = vadd.f32 %v668_v0, %v523_v16 }
 0x1e1   : > { %v782_v62 = vpop.f32.mrf.mxu0 }
 0x1e2   : > { %v853_v6 = vpop.f32.mrf.mxu1  ;;  %v858_v40 = vadd.f32 %v782_v62, %v596_v56 }
 0x1e3   : > { %v784_v23 = vpop.f32.mrf.mxu0  ;;  %v860_v24 = vadd.f32 %v853_v6, %v667_v22 }
 0x1e4   : > { %v855_v30 = vpop.f32.mrf.mxu1  ;;  %v859_v52 = vadd.f32 %v784_v23, %v598_v7 }
 0x1e5   : > { %v861_v53 = vadd.f32 %v855_v30, %v669_v48 }
 0x1e9   : > { %v973_v39 = vpop.f32.mrf.mxu0 }
 0x1ea   : > { %v1044_v45 = vpop.f32.mrf.mxu1  ;;  %v1049_v63 = vadd.f32 %v973_v39, %v858_v40 }
 0x1eb   : > { %v975_v58 = vpop.f32.mrf.mxu0  ;;  %v1051_v54 = vadd.f32 %v1044_v45, %v860_v24 }
 0x1ec   : > { %v1046_v60 = vpop.f32.mrf.mxu1  ;;  %v1050_v31 = vadd.f32 %v975_v58, %v859_v52 }
 0x1ed   : > { %v1052_v56 = vadd.f32 %v1046_v60, %v861_v53 }
 0x1f1   : > { %v1164_v12 = vpop.f32.mrf.mxu0 }
 0x1f2   : > { %v1235_v55 = vpop.f32.mrf.mxu1 }
 0x1f3   : > { %v1166_v10 = vpop.f32.mrf.mxu0  ;;  %v1242_v16 = vadd.f32 %v1235_v55, %v1051_v54 }
 0x1f4   : > { %v1237_v59 = vpop.f32.mrf.mxu1  ;;  %v1241_v5 = vadd.f32 %v1166_v10, %v1050_v31 }
 0x1f5   : > { %v1243_v23 = vadd.f32 %v1237_v59, %v1052_v56 }
 0x1f9   : > { %v1355_v9 = vpop.f32.mrf.mxu0 }
 0x1fa   : > { %v1426_v14 = vpop.f32.mrf.mxu1 }
 0x1fb   : > { %v1357_v57 = vpop.f32.mrf.mxu0  ;;  %v1433_v30 = vadd.f32 %v1426_v14, %v1242_v16 }
 0x1fc   : > { %v1428_v35 = vpop.f32.mrf.mxu1  ;;  %v1432_v39 = vadd.f32 %v1357_v57, %v1241_v5 }
 0x1fd   : > { %v1434_v40 = vadd.f32 %v1428_v35, %v1243_v23 }
 0x201   : > { %v1546_v3 = vpop.f32.mrf.mxu0 }
 0x202   : > { %v1617_v17 = vpop.f32.mrf.mxu1 }
 0x203   : > { %v1548_v4 = vpop.f32.mrf.mxu0  ;;  %v1624_v52 = vadd.f32 %v1617_v17, %v1433_v30 }
 0x204   : > { %v1619_v46 = vpop.f32.mrf.mxu1  ;;  %v1623_v22 = vadd.f32 %v1548_v4, %v1432_v39 }
 0x205   : > { %v1625_v10 = vadd.f32 %v1619_v46, %v1434_v40 }
 0x209   : > { %v1737_v47 = vpop.f32.mrf.mxu0 }
 0x20a   : > { %v6424_v20 = vpop.f32.mrf.mxu1 }
 0x20b   : > { %v1739_v61 = vpop.f32.mrf.mxu0  ;;  %v1815_v59 = vadd.f32 %v6424_v20, %v1624_v52 }
 0x20c   : > { %v6426_v28 = vpop.f32.mrf.mxu1 }
 0x211   : > { %v1928_v15 = vpop.f32.mrf.mxu0 }
 0x212   : > { %v6428_v32 = vpop.f32.mrf.mxu1 }
 0x213   : > { %v6430_v34 = vpop.f32.mrf.mxu0  ;;  %v2006_v4 = vadd.f32 %v6428_v32, %v1815_v59 }
 0x214   : > { %v6432_v51 = vpop.f32.mrf.mxu1 }
 0x219   : > { %v2119_v49 = vpop.f32.mrf.mxu0 }
 0x21a   : > { %v6434_v11 = vpop.f32.mrf.mxu1 }
 0x21b   : > { %v6436_v37 = vpop.f32.mrf.mxu0  ;;  %v2197_v54 = vadd.f32 %v6434_v11, %v2006_v4 }
 0x21c   : > { %v6438_v21 = vpop.f32.mrf.mxu1 }
 0x221   : > { %v6440_v33 = vpop.f32.mrf.mxu0 }
 0x222   : > { %v6442_v44 = vpop.f32.mrf.mxu1 }
 0x223   : > { %v6444_v50 = vpop.f32.mrf.mxu0  ;;  %v2388_v32 = vadd.f32 %v6442_v44, %v2197_v54 }
 0x224   : > { %v6446_v1 = vpop.f32.mrf.mxu1 }
 0x229   : > { %v6448_v19 = vpop.f32.mrf.mxu0 }
 0x22a   : > { %v6450_v13 = vpop.f32.mrf.mxu1 }
 0x22b   : > { %v6452_v27 = vpop.f32.mrf.mxu0  ;;  %v2579_v16 = vadd.f32 %v6450_v13, %v2388_v32 }
 0x22c   : > { %v6454_v36 = vpop.f32.mrf.mxu1 }
 0x231   : > { %v6456_v43 = vpop.f32.mrf.mxu0 }
 0x232   : > { %v6458_v2 = vpop.f32.mrf.mxu1 }
 0x233   : > { %6543 = vst [vmem:[#allocation3_spill] sm:$0xff] %v6458_v2  ;;  %v6460_v8 = vpop.f32.mrf.mxu0  ;;  %v1240_v2 = vadd.f32 %v1164_v12, %v1049_v63 }
 0x234   : > { %v6462_v18 = vpop.f32.mrf.mxu1 }
 0x235   : > { %6544 = vst [vmem:[#allocation5_spill] sm:$0xff] %v6462_v18  ;;  %v6464_v26 = vpop.f32.mrf.mxu0  ;;  %v1431_v38 = vadd.f32 %v1355_v9, %v1240_v2  ;;  %v1814_v9 = vadd.f32 %v1739_v61, %v1623_v22 }
 0x237   : > { %v6466_v41 = vpop.f32.mrf.mxu0  ;;  %v6468_v42 = vpop.f32.mrf.mxu1  ;;  %v1622_v6 = vadd.f32 %v1546_v3, %v1431_v38  ;;  %v1816_v3 = vadd.f32 %v6426_v28, %v1625_v10  ;;  %v2005_v14 = vadd.f32 %v6430_v34, %v1814_v9 }
 0x239   : > { %v6470_v29 = vpop.f32.mrf.mxu0  ;;  %v6472_v25 = vpop.f32.mrf.mxu1  ;;  %v1813_v45 = vadd.f32 %v1737_v47, %v1622_v6  ;;  %v2007_v46 = vadd.f32 %v6432_v51, %v1816_v3  ;;  %v2196_v61 = vadd.f32 %v6436_v37, %v2005_v14 }
 0x23a   : > { %v6545_v39 = vld [vmem:[#allocation3_spill] sm:$0xff] }
 0x23b   : > { %v6474_v62 = vpop.f32.mrf.mxu0  ;;  %v6476_v18 = vpop.f32.mrf.mxu1  ;;  %v2004_v2 = vadd.f32 %v1928_v15, %v1813_v45  ;;  %v2387_v28 = vadd.f32 %v6444_v50, %v2196_v61  ;;  %v2198_v56 = vadd.f32 %v6438_v21, %v2007_v46  ;;  %v2770_v44 = vadd.f32 %v6545_v39, %v2579_v16 }
 0x23c   : > { %v6546_v40 = vld [vmem:[#allocation5_spill] sm:$0xff] }
 0x23d   : > { %v6478_v7 = vpop.f32.mrf.mxu1  ;;  %v2195_v24 = vadd.f32 %v2119_v49, %v2004_v2  ;;  %v2578_v51 = vadd.f32 %v6452_v27, %v2387_v28  ;;  %v2948_v13 = vadd.f32 %v6468_v42, %v2770_v44 }
 0x23e   : > { %v3252_v0 = vpop.f32.mrf.mxu0 }
 0x23f   : > { %v2386_v15 = vadd.f32 %v6440_v33, %v2195_v24  ;;  %v2389_v33 = vadd.f32 %v6446_v1, %v2198_v56  ;;  %v2769_v50 = vadd.f32 %v6460_v8, %v2578_v51 }
 0x240   : > { %v3254_v58 = vpop.f32.mrf.mxu0 }
 0x241   : > { %v2577_v34 = vadd.f32 %v6448_v19, %v2386_v15  ;;  %v2580_v21 = vadd.f32 %v6454_v36, %v2389_v33  ;;  %v2947_v27 = vadd.f32 %v6466_v41, %v2769_v50  ;;  %v3139_v36 = vadd.f32 %v6476_v18, %v2948_v13 }
 0x242   : > { %v3323_v12 = vpop.f32.mrf.mxu1 }
 0x243   : > { %v2768_v37 = vadd.f32 %v6456_v43, %v2577_v34  ;;  %v2771_v1 = vadd.f32 %v6546_v40, %v2580_v21  ;;  %v3138_v8 = vadd.f32 %v6474_v62, %v2947_v27  ;;  %v3330_v59 = vadd.f32 %v3323_v12, %v3139_v36 }
 0x244   : > { %v3325_v60 = vpop.f32.mrf.mxu1 }
 0x245   : > { %v2946_v19 = vadd.f32 %v6464_v26, %v2768_v37  ;;  %v2949_v52 = vadd.f32 %v6472_v25, %v2771_v1  ;;  %v3329_v9 = vadd.f32 %v3254_v58, %v3138_v8 }
 0x246   : > { %v3443_v48 = vpop.f32.mrf.mxu0 }
 0x247   : > { %v3137_v43 = vadd.f32 %v6470_v29, %v2946_v19  ;;  %v3140_v29 = vadd.f32 %v6478_v7, %v2949_v52 }
 0x248   : > { %v3445_v63 = vpop.f32.mrf.mxu0 }
 0x249   : > { %v3328_v45 = vadd.f32 %v3252_v0, %v3137_v43  ;;  %v3520_v14 = vadd.f32 %v3445_v63, %v3329_v9  ;;  %v3331_v4 = vadd.f32 %v3325_v60, %v3140_v29 }
 0x24a   : > { %v3514_v55 = vpop.f32.mrf.mxu1 }
 0x24b   : > { %v3519_v2 = vadd.f32 %v3443_v48, %v3328_v45  ;;  %v3521_v46 = vadd.f32 %v3514_v55, %v3330_v59 }
 0x24c   : > { %v3516_v53 = vpop.f32.mrf.mxu1 }
 0x24d   : > { %v3522_v25 = vadd.f32 %v3516_v53, %v3331_v4 }
 0x24e   : > { %v3634_v57 = vpop.f32.mrf.mxu0 }
 0x24f   : > { %v3710_v24 = vadd.f32 %v3634_v57, %v3519_v2 }
 0x250   : > { %v3636_v35 = vpop.f32.mrf.mxu0 }
 0x251   : > { %v3711_v0 = vadd.f32 %v3636_v35, %v3520_v14 }
 0x252   : > { %v3705_v47 = vpop.f32.mrf.mxu1  ;;  %v3812_v17 = vpop.f32.mrf.mxu0 }
 0x253   : > { %v3888_v61 = vadd.f32 %v3812_v17, %v3710_v24  ;;  %v3712_v54 = vadd.f32 %v3705_v47, %v3521_v46 }
 0x254   : > { %v3707_v31 = vpop.f32.mrf.mxu1  ;;  %v3814_v20 = vpop.f32.mrf.mxu0 }
 0x255   : > { %v3889_v28 = vadd.f32 %v3814_v20, %v3711_v0  ;;  %v3713_v34 = vadd.f32 %v3707_v31, %v3522_v25 }
 0x256   : > { %v3883_v49 = vpop.f32.mrf.mxu1 }
 0x257   : > { %v3990_v5 = vpop.f32.mrf.mxu0  ;;  %v3890_v56 = vadd.f32 %v3883_v49, %v3712_v54 }
 0x258   : > { %v3885_v38 = vpop.f32.mrf.mxu1  ;;  %v4066_v58 = vadd.f32 %v3990_v5, %v3888_v61 }
 0x259   : > { %v3992_v11 = vpop.f32.mrf.mxu0  ;;  %v3891_v57 = vadd.f32 %v3885_v38, %v3713_v34 }
 0x25a   : > { %v4061_v23 = vpop.f32.mrf.mxu1  ;;  %v4067_v12 = vadd.f32 %v3992_v11, %v3889_v28 }
 0x25b   : > { %v4168_v6 = vpop.f32.mrf.mxu0  ;;  %v4068_v51 = vadd.f32 %v4061_v23, %v3890_v56 }
 0x25c   : > { %v4063_v30 = vpop.f32.mrf.mxu1  ;;  %v4244_v32 = vadd.f32 %v4168_v6, %v4066_v58 }
 0x25d   : > { %v4170_v22 = vpop.f32.mrf.mxu0  ;;  %v4069_v17 = vadd.f32 %v4063_v30, %v3891_v57 }
 0x25e   : > { %v4239_v26 = vpop.f32.mrf.mxu1  ;;  %v4245_v55 = vadd.f32 %v4170_v22, %v4067_v12 }
 0x25f   : > { %v4346_v10 = vpop.f32.mrf.mxu0  ;;  %v4246_v33 = vadd.f32 %v4239_v26, %v4068_v51 }
 0x260   : > { %v4241_v41 = vpop.f32.mrf.mxu1  ;;  %v4422_v37 = vadd.f32 %v4346_v10, %v4244_v32  ;;  %v5320_v10 = vpop.permute.xlu0 %5319 }
 0x261   : > { %v4348_v3 = vpop.f32.mrf.mxu0  ;;  %v4247_v5 = vadd.f32 %v4241_v41, %v4069_v17 }
 0x262   : > { %v4417_v42 = vpop.f32.mrf.mxu1  ;;  %v4423_v47 = vadd.f32 %v4348_v3, %v4245_v55 }
 0x263   : > { %v4524_v62 = vpop.f32.mrf.mxu0  ;;  %v4424_v50 = vadd.f32 %v4417_v42, %v4246_v33 }
 0x264   : > { %v4419_v15 = vpop.f32.mrf.mxu1  ;;  %v4600_v16 = vadd.f32 %v4524_v62, %v4422_v37 }
 0x265   : > { %v4526_v18 = vpop.f32.mrf.mxu0  ;;  %v4425_v21 = vadd.f32 %v4419_v15, %v4247_v5 }
 0x266   : > { %v4595_v48 = vpop.f32.mrf.mxu1  ;;  %v4601_v49 = vadd.f32 %v4526_v18, %v4423_v47 }
 0x267   : > { %v4702_v7 = vpop.f32.mrf.mxu0  ;;  %v4602_v39 = vadd.f32 %v4595_v48, %v4424_v50 }
 0x268   : > { %v4597_v63 = vpop.f32.mrf.mxu1  ;;  %v4778_v19 = vadd.f32 %v4702_v7, %v4600_v16 }
 0x269   : > { %v4704_v60 = vpop.f32.mrf.mxu0  ;;  %v4603_v27 = vadd.f32 %v4597_v63, %v4425_v21 }
 0x26a   : > { %v4773_v35 = vpop.f32.mrf.mxu1  ;;  %v4779_v23 = vadd.f32 %v4704_v60, %v4601_v49 }
 0x26b   : > { %v4880_v53 = vpop.f32.mrf.mxu0  ;;  %v4780_v43 = vadd.f32 %v4773_v35, %v4602_v39 }
 0x26c   : > { %v4775_v20 = vpop.f32.mrf.mxu1  ;;  %v4956_v44 = vadd.f32 %v4880_v53, %v4778_v19 }
 0x26d   : > { %v4882_v31 = vpop.f32.mrf.mxu0  ;;  %v4781_v22 = vadd.f32 %v4775_v20, %v4603_v27 }
 0x26e   : > { %v4951_v11 = vpop.f32.mrf.mxu1  ;;  %v4957_v40 = vadd.f32 %v4882_v31, %v4779_v23 }
 0x26f   : > { %v5058_v38 = vpop.f32.mrf.mxu0  ;;  %v4958_v8 = vadd.f32 %v4951_v11, %v4780_v43 }
 0x270   : > { %v4953_v6 = vpop.f32.mrf.mxu1  ;;  %v5134_v1 = vadd.f32 %v5058_v38, %v4956_v44 }
 0x271   : > { %v5060_v30 = vpop.f32.mrf.mxu0  ;;  %v4959_v9 = vadd.f32 %v4953_v6, %v4781_v22 }
 0x272   : > { %v5129_v13 = vpop.f32.mrf.mxu1  ;;  %v5135_v26 = vadd.f32 %v5060_v30, %v4957_v40 }
 0x273   : > { %v5236_v45 = vpop.f32.mrf.mxu0  ;;  %v5136_v2 = vadd.f32 %v5129_v13, %v4958_v8 }
 0x274   : > { %v5312_v52 = vadd.f32 %v5236_v45, %v5134_v1  ;;  %v5131_v36 = vpop.f32.mrf.mxu1 }
 0x275   : > { %v5238_v41 = vpop.f32.mrf.mxu0  ;;  %v5137_v14 = vadd.f32 %v5131_v36, %v4959_v9 }
 0x276   : > { %v5322_v29 = vadd.f32 %v5320_v10, %v5312_v52  ;;  %v5313_v59 = vadd.f32 %v5238_v41, %v5135_v26  ;;  %v5307_v3 = vpop.f32.mrf.mxu1 }
 0x277   : > { %v5314_v24 = vadd.f32 %v5307_v3, %v5136_v2 }
 0x278   : > { %v5330_v42 = vrot.slane %v5322_v29, 4  ;;  %v5323_v4 = vadd.f32 %v5320_v10, %v5313_v59  ;;  %v5309_v46 = vpop.f32.mrf.mxu1 }
 0x279   : > { %v5324_v62 = vadd.f32 %v5320_v10, %v5314_v24  ;;  %v5315_v0 = vadd.f32 %v5309_v46, %v5137_v14 }
 0x27a   : > { %5338 = vst [vmem:[%s5630_s10 + $0x20] ss:$-28 sps:$4 sm:$0xff] %v5330_v42   ;;  %v5331_v61 = vrot.slane %v5323_v4, 4 }
 0x27b   : > { %v5332_v15 = vrot.slane %v5324_v62, 4  ;;  %v5325_v25 = vadd.f32 %v5320_v10, %v5315_v0 }
 0x27c   : > { %5339 = vst [vmem:[%s5630_s10 + $0x28] ss:$-28 sps:$4 sm:$0xff] %v5331_v61  }
 0x27d   : > { %5340 = vst [vmem:[%s5630_s10 + $0x30] ss:$-28 sps:$4 sm:$0xff] %v5332_v15   ;;  %v5333_v54 = vrot.slane %v5325_v25, 4 }
 0x27f   : > { %5341 = vst [vmem:[%s5630_s10 + $0x38] ss:$-28 sps:$4 sm:$0xff] %v5333_v54  }
 0x280 PF: > { %s16_s21 = sadd.s32 1, %s5554_s21  }
 0x281   : > { %p13_p4 = scmp.ge.s32.totalorder %s16_s21, 4  }
 0x283   :  { %15 = sbr.rel (!%p13_p4) target bundleno = 1 (0x1), region = 126 }

</bundles_post_ra>
